<compile_context>
chip_gen: v7x
topology: tpu7x:2x2x1
jax: 0.10.0
libtpu: 0.0.40
codegen_flags: <defaults>
</compile_context>

<pallas_src>
import functools

import jax
import jax.numpy as jnp
import numpy as np
from jax import lax
from jax.experimental import pallas as pl
from jax.experimental.pallas import tpu as pltpu


# --------------------------------------------------------------------------
# Kernel
# --------------------------------------------------------------------------
def _basic_block_kernel(x_ref, w1_ref, w2_ref, s1_ref, b1_ref, s2_ref, b2_ref,
                        o_ref, *, H):
    """One grid step: NB images stacked along rows -> tile (R, WC), R = NB*H."""
    R, WC = x_ref.shape
    x = x_ref[...].astype(jnp.float32)                        # (R, WC)

    # Image-local row index; masks keep the row rolls below from leaking rows
    # across image boundaries (or wrapping around the stacked block).
    row = lax.broadcasted_iota(jnp.int32, (R, WC), 0) % H
    has_up = row >= 1          # source row y-1 exists inside this image
    has_dn = row < H - 1       # source row y+1 exists inside this image

    def conv3x3(t, w_ref):
        # Only the 3 dy row taps are built here; the 3 dx column shifts and
        # the x-edge zeroing live inside the block-tridiagonal weight.
        up = jnp.where(has_up, pltpu.roll(t, shift=1, axis=0), 0.0)      # y-1
        dn = jnp.where(has_dn, pltpu.roll(t, shift=R - 1, axis=0), 0.0)  # y+1
        patches = jnp.concatenate(
            [up.astype(jnp.bfloat16),
             t.astype(jnp.bfloat16),
             dn.astype(jnp.bfloat16)], axis=1)                # (R, 3*WC) bf16
        # Single MXU matmul, f32 accumulation.
        return jnp.dot(patches, w_ref[...],
                       preferred_element_type=jnp.float32)    # (R, WC) f32

    t = jnp.maximum(x * s1_ref[...] + b1_ref[...], 0.0)       # BN1 + ReLU
    y1 = conv3x3(t, w1_ref)                                   # conv1 (3x3)
    t2 = jnp.maximum(y1 * s2_ref[...] + b2_ref[...], 0.0)     # BN2 + ReLU
    y2 = conv3x3(t2, w2_ref)                                  # conv2 (3x3)
    o_ref[...] = (y2 + x).astype(o_ref.dtype)                 # residual add


# --------------------------------------------------------------------------
# One-time parameter preparation (hoisted out of the per-forward path)
# --------------------------------------------------------------------------
def _expand_conv_weight(w_oihw, W):
    """(Cout, Cin, 3, 3) OIHW -> (3*W*Cin, W*Cout) block-tridiagonal bf16.

    Wbig[dy*W*Cin + xp*Cin + ci, x*Cout + co] = w[co, ci, dy, xp - x + 1]
    if |xp - x| <= 1 else 0.  Folds the dx column shifts AND the x-edge zero
    padding into the weight, so the kernel only builds dy row taps.
    """
    cout, cin, kh, kw = w_oihw.shape
    assert kh == 3 and kw == 3
    w_hwio = jnp.transpose(w_oihw, (2, 3, 1, 0))               # (3, 3, Cin, Cout)
    # shift[dx, xp, x] = 1 iff xp == x + dx - 1 (edge-truncated at x borders)
    shift = jnp.stack([jnp.eye(W, k=1 - dx, dtype=w_hwio.dtype)
                       for dx in range(3)])                    # (3, W, W)
    big = jnp.einsum('yzio,zax->yaixo', w_hwio, shift)         # (3,W,Cin,W,Cout)
    return big.reshape(3 * W * cin, W * cout).astype(jnp.bfloat16)


def _fold_bn(gamma, beta, mean, var, W, eps):
    s = gamma / jnp.sqrt(var + eps)
    sh = beta - mean * s
    return (jnp.tile(s, W).reshape(1, -1).astype(jnp.float32),
            jnp.tile(sh, W).reshape(1, -1).astype(jnp.float32))


def prepare_block_params(w1_oihw, w2_oihw, bn1, bn2, W, eps=1e-5):
    """Expand conv weights + fold BN once; reuse across forward calls."""
    s1, b1 = _fold_bn(*bn1, W, eps)
    s2, b2 = _fold_bn(*bn2, W, eps)
    return dict(w1=_expand_conv_weight(w1_oihw, W),
                w2=_expand_conv_weight(w2_oihw, W),
                s1=s1, b1=b1, s2=s2, b2=b2)


def _pick_nb(N, H, max_rows=256):
    """Largest per-step image count s.t. NB*H <= max_rows (fills the MXU
    M-dim) while keeping the grid length >= 2 when possible (v7x megacore)."""
    cand = [nb for nb in range(1, N + 1) if N % nb == 0 and nb * H <= max_rows]
    if not cand:
        return 1
    cand2 = [nb for nb in cand if N // nb >= 2]
    return max(cand2 if cand2 else cand)


# --------------------------------------------------------------------------
# Forward wrapper (lane-dense activations in, lane-dense activations out)
# --------------------------------------------------------------------------
def basic_block_forward(x_lane, params, *, nb=None):
    """Fused BasicBlock forward on lane-dense activations.

    x_lane: (N, H, W*C) float32, channel-minor (NHWC flattened over (W, C)).
    Activations are meant to stay in this layout across consecutive blocks;
    the NCHW conversion is a real HBM transpose and must live outside the
    per-block hot path.
    """
    N, H, WC = x_lane.shape
    assert WC % 128 == 0 and H % 8 == 0, \
        "lane-dense layout requires W*C % 128 == 0 and H % 8 == 0"
    if nb is None:
        nb = _pick_nb(N, H)
    assert N % nb == 0
    R = nb * H                                   # rows per grid step (MXU M)

    x_rows = x_lane.reshape(N * H, WC)           # pure collapse, no data move
    kernel = functools.partial(_basic_block_kernel, H=H)
    nbuf1 = pl.Buffered(buffer_count=1)          # constant inputs: single buffer

    out_rows = pl.pallas_call(
        kernel,
        out_shape=jax.ShapeDtypeStruct((N * H, WC), x_rows.dtype),
        grid_spec=pltpu.PrefetchScalarGridSpec(
            num_scalar_prefetch=0,
            grid=(N // nb,),
            in_specs=[
                pl.BlockSpec((R, WC), lambda n: (n, 0)),
                pl.BlockSpec((3 * WC, WC), lambda n: (0, 0), pipeline_mode=nbuf1),
                pl.BlockSpec((3 * WC, WC), lambda n: (0, 0), pipeline_mode=nbuf1),
                pl.BlockSpec((1, WC), lambda n: (0, 0), pipeline_mode=nbuf1),
                pl.BlockSpec((1, WC), lambda n: (0, 0), pipeline_mode=nbuf1),
                pl.BlockSpec((1, WC), lambda n: (0, 0), pipeline_mode=nbuf1),
                pl.BlockSpec((1, WC), lambda n: (0, 0), pipeline_mode=nbuf1),
            ],
            out_specs=pl.BlockSpec((R, WC), lambda n: (n, 0)),
        ),
        compiler_params=pltpu.CompilerParams(
            dimension_semantics=("parallel",)),
    )(x_rows, params["w1"], params["w2"],
      params["s1"], params["b1"], params["s2"], params["b2"])

    return out_rows.reshape(N, H, WC)


# --------------------------------------------------------------------------
# Pure-JAX reference (eval-mode BN), mirrors the PyTorch forward
# --------------------------------------------------------------------------
def reference_forward(x, w1_oihw, w2_oihw, bn1, bn2, eps=1e-5):
    def bn(v, p):
        g, b, m, var = p
        inv = g / jnp.sqrt(var + eps)
        return (v - m[None, :, None, None]) * inv[None, :, None, None] \
            + b[None, :, None, None]
    dn = ('NCHW', 'OIHW', 'NCHW')
    t = jax.nn.relu(bn(x, bn1))
    y1 = lax.conv_general_dilated(t, w1_oihw, (1, 1), 'SAME',
                                  dimension_numbers=dn)
    t2 = jax.nn.relu(bn(y1, bn2))
    y2 = lax.conv_general_dilated(t2, w2_oihw, (1, 1), 'SAME',
                                  dimension_numbers=dn)
    return y2 + x


if __name__ == "__main__":
    key = jax.random.PRNGKey(0)
    # W*C = 128 -> lane-dense minor axis.  N chosen so NB*H = 128 MXU rows per
    # grid step with grid length 2 (both v7x TensorCores busy).
    N, C, H, W = 16, 8, 16, 16
    eps = 1e-5
    ks = jax.random.split(key, 6)

    x_nchw = jax.random.normal(ks[0], (N, C, H, W), jnp.float32)
    w1_oihw = 0.1 * jax.random.normal(ks[1], (C, C, 3, 3), jnp.float32)
    w2_oihw = 0.1 * jax.random.normal(ks[2], (C, C, 3, 3), jnp.float32)

    def bn_params(k):
        k1, k2, k3, k4 = jax.random.split(k, 4)
        gamma = 1.0 + 0.1 * jax.random.normal(k1, (C,), jnp.float32)
        beta = 0.1 * jax.random.normal(k2, (C,), jnp.float32)
        mean = 0.1 * jax.random.normal(k3, (C,), jnp.float32)
        var = jax.random.uniform(k4, (C,), jnp.float32, minval=0.5, maxval=1.5)
        return gamma, beta, mean, var

    bn1 = bn_params(ks[3])
    bn2 = bn_params(ks[4])

    # One-time prep (hoisted out of the per-forward path).
    params = prepare_block_params(w1_oihw, w2_oihw, bn1, bn2, W, eps)

    # One-time layout change for the demo; in a full network the activations
    # stay lane-dense across blocks (this transpose is NOT free, which is why
    # it lives outside the forward).
    x_lane = jnp.transpose(x_nchw, (0, 2, 3, 1)).reshape(N, H, W * C)

    out_lane = basic_block_forward(x_lane, params)
    out_lane = jax.block_until_ready(out_lane)

    out_nchw = jnp.transpose(out_lane.reshape(N, H, W, C), (0, 3, 1, 2))
    ref = reference_forward(x_nchw, w1_oihw, w2_oihw, bn1, bn2, eps)
    assert out_nchw.shape == ref.shape and out_nchw.dtype == ref.dtype
    # Tolerance accounts for bf16 conv inputs (f32 accumulation) vs f32 ref.
    np.testing.assert_allclose(np.asarray(out_nchw), np.asarray(ref),
                               rtol=2e-2, atol=2e-2)
    print("KERNEL_OK")
</pallas_src>

<mosaic_0001>
module attributes {stable_mosaic.version = 11 : i64} {
  func.func @_basic_block_kernel(%arg0: i32, %arg1: memref<128x128xf32, #tpu.memory_space<vmem>>, %arg2: memref<384x128xbf16, #tpu.memory_space<vmem>>, %arg3: memref<384x128xbf16, #tpu.memory_space<vmem>>, %arg4: memref<1x128xf32, #tpu.memory_space<vmem>>, %arg5: memref<1x128xf32, #tpu.memory_space<vmem>>, %arg6: memref<1x128xf32, #tpu.memory_space<vmem>>, %arg7: memref<1x128xf32, #tpu.memory_space<vmem>>, %arg8: memref<128x128xf32, #tpu.memory_space<vmem>>) attributes {dimension_semantics = [#tpu.dimension_semantics<parallel>], iteration_bounds = array<i64: 2>, scalar_prefetch = 0 : i64, scratch_operands = 0 : i64, tpu.core_type = #tpu.core_type<tc>, window_params = [{transform_indices = @transform_0, window_bounds = array<i64: 128, 128>}, {pipeline_mode = #tpu.pipeline_mode<synchronous>, transform_indices = @transform_1, window_bounds = array<i64: 384, 128>}, {pipeline_mode = #tpu.pipeline_mode<synchronous>, transform_indices = @transform_2, window_bounds = array<i64: 384, 128>}, {pipeline_mode = #tpu.pipeline_mode<synchronous>, transform_indices = @transform_3, window_bounds = array<i64: 1, 128>}, {pipeline_mode = #tpu.pipeline_mode<synchronous>, transform_indices = @transform_4, window_bounds = array<i64: 1, 128>}, {pipeline_mode = #tpu.pipeline_mode<synchronous>, transform_indices = @transform_5, window_bounds = array<i64: 1, 128>}, {pipeline_mode = #tpu.pipeline_mode<synchronous>, transform_indices = @transform_6, window_bounds = array<i64: 1, 128>}, {transform_indices = @transform_7, window_bounds = array<i64: 128, 128>}]} {
    %c0 = arith.constant 0 : index
    %c0_0 = arith.constant 0 : index
    %0 = vector.load %arg1[%c0, %c0_0] : memref<128x128xf32, #tpu.memory_space<vmem>>, vector<128x128xf32>
    %1 = tpu.iota {dimensions = array<i32: 0>} : vector<128x128xi32>
    %c16_i32 = arith.constant 16 : i32
    %c0_i32 = arith.constant 0 : i32
    %2 = arith.cmpi eq, %c16_i32, %c0_i32 : i32
    %c1_i32 = arith.constant 1 : i32
    %3 = arith.select %2, %c1_i32, %c16_i32 : i32
    %4 = vector.broadcast %3 : i32 to vector<128x128xi32>
    %5 = arith.remsi %1, %4 : vector<128x128xi32>
    %c0_i32_1 = arith.constant 0 : i32
    %6 = vector.broadcast %c0_i32_1 : i32 to vector<128x128xi32>
    %7 = arith.cmpi ne, %5, %6 : vector<128x128xi32>
    %c0_i32_2 = arith.constant 0 : i32
    %8 = vector.broadcast %c0_i32_2 : i32 to vector<128x128xi32>
    %9 = arith.cmpi slt, %5, %8 : vector<128x128xi32>
    %c0_i32_3 = arith.constant 0 : i32
    %10 = arith.cmpi slt, %3, %c0_i32_3 : i32
    %11 = vector.broadcast %10 : i1 to vector<128x128xi1>
    %12 = vector.broadcast %11 : vector<128x128xi1> to vector<128x128xi1>
    %13 = arith.xori %9, %12 : vector<128x128xi1>
    %14 = arith.andi %13, %7 : vector<128x128xi1>
    %15 = vector.broadcast %3 : i32 to vector<128x128xi32>
    %16 = arith.addi %5, %15 : vector<128x128xi32>
    %17 = arith.select %14, %16, %5 : vector<128x128xi1>, vector<128x128xi32>
    %c1_i32_4 = arith.constant 1 : i32
    %18 = vector.broadcast %c1_i32_4 : i32 to vector<128x128xi32>
    %19 = arith.cmpi sge, %17, %18 : vector<128x128xi32>
    %c15_i32 = arith.constant 15 : i32
    %20 = vector.broadcast %c15_i32 : i32 to vector<128x128xi32>
    %21 = arith.cmpi slt, %17, %20 : vector<128x128xi32>
    %c0_5 = arith.constant 0 : index
    %c0_6 = arith.constant 0 : index
    %22 = vector.load %arg4[%c0_5, %c0_6] : memref<1x128xf32, #tpu.memory_space<vmem>>, vector<1x128xf32>
    %23 = vector.broadcast %22 : vector<1x128xf32> to vector<128x128xf32>
    %24 = arith.mulf %0, %23 : vector<128x128xf32>
    %c0_7 = arith.constant 0 : index
    %c0_8 = arith.constant 0 : index
    %25 = vector.load %arg5[%c0_7, %c0_8] : memref<1x128xf32, #tpu.memory_space<vmem>>, vector<1x128xf32>
    %26 = vector.broadcast %25 : vector<1x128xf32> to vector<128x128xf32>
    %27 = arith.addf %24, %26 : vector<128x128xf32>
    %cst = arith.constant 0.000000e+00 : f32
    %28 = vector.broadcast %cst : f32 to vector<128x128xf32>
    %29 = arith.maximumf %27, %28 : vector<128x128xf32>
    %c1_i32_9 = arith.constant 1 : i32
    %30 = tpu.dynamic_rotate %29 by %c1_i32_9 dim 0 : vector<128x128xf32>, i32 -> vector<128x128xf32>
    %cst_10 = arith.constant 0.000000e+00 : f32
    %31 = vector.broadcast %cst_10 : f32 to vector<128x128xf32>
    %32 = arith.select %19, %30, %31 : vector<128x128xi1>, vector<128x128xf32>
    %c127_i32 = arith.constant 127 : i32
    %33 = tpu.dynamic_rotate %29 by %c127_i32 dim 0 : vector<128x128xf32>, i32 -> vector<128x128xf32>
    %cst_11 = arith.constant 0.000000e+00 : f32
    %34 = vector.broadcast %cst_11 : f32 to vector<128x128xf32>
    %35 = arith.select %21, %33, %34 : vector<128x128xi1>, vector<128x128xf32>
    %36 = arith.truncf %32 : vector<128x128xf32> to vector<128x128xbf16>
    %37 = arith.truncf %29 : vector<128x128xf32> to vector<128x128xbf16>
    %38 = arith.truncf %35 : vector<128x128xf32> to vector<128x128xbf16>
    %39 = tpu.concatenate %36, %37, %38 in 1 : vector<128x128xbf16>, vector<128x128xbf16>, vector<128x128xbf16> -> vector<128x384xbf16>
    %c0_12 = arith.constant 0 : index
    %c0_13 = arith.constant 0 : index
    %40 = vector.load %arg2[%c0_12, %c0_13] : memref<384x128xbf16, #tpu.memory_space<vmem>>, vector<384x128xbf16>
    %cst_14 = arith.constant dense<0.000000e+00> : vector<128x128xf32>
    %41 = tpu.matmul %39, %40, %cst_14 {dimension_numbers = #tpu.dot_dimension_numbers<[1], [0], [0], [1], [0, 0, 1, 1], [], []>} : vector<128x384xbf16>, vector<384x128xbf16>, vector<128x128xf32> -> vector<128x128xf32>
    %c0_15 = arith.constant 0 : index
    %c0_16 = arith.constant 0 : index
    %42 = vector.load %arg6[%c0_15, %c0_16] : memref<1x128xf32, #tpu.memory_space<vmem>>, vector<1x128xf32>
    %43 = vector.broadcast %42 : vector<1x128xf32> to vector<128x128xf32>
    %44 = arith.mulf %41, %43 : vector<128x128xf32>
    %c0_17 = arith.constant 0 : index
    %c0_18 = arith.constant 0 : index
    %45 = vector.load %arg7[%c0_17, %c0_18] : memref<1x128xf32, #tpu.memory_space<vmem>>, vector<1x128xf32>
    %46 = vector.broadcast %45 : vector<1x128xf32> to vector<128x128xf32>
    %47 = arith.addf %44, %46 : vector<128x128xf32>
    %cst_19 = arith.constant 0.000000e+00 : f32
    %48 = vector.broadcast %cst_19 : f32 to vector<128x128xf32>
    %49 = arith.maximumf %47, %48 : vector<128x128xf32>
    %c1_i32_20 = arith.constant 1 : i32
    %50 = tpu.dynamic_rotate %49 by %c1_i32_20 dim 0 : vector<128x128xf32>, i32 -> vector<128x128xf32>
    %cst_21 = arith.constant 0.000000e+00 : f32
    %51 = vector.broadcast %cst_21 : f32 to vector<128x128xf32>
    %52 = arith.select %19, %50, %51 : vector<128x128xi1>, vector<128x128xf32>
    %c127_i32_22 = arith.constant 127 : i32
    %53 = tpu.dynamic_rotate %49 by %c127_i32_22 dim 0 : vector<128x128xf32>, i32 -> vector<128x128xf32>
    %cst_23 = arith.constant 0.000000e+00 : f32
    %54 = vector.broadcast %cst_23 : f32 to vector<128x128xf32>
    %55 = arith.select %21, %53, %54 : vector<128x128xi1>, vector<128x128xf32>
    %56 = arith.truncf %52 : vector<128x128xf32> to vector<128x128xbf16>
    %57 = arith.truncf %49 : vector<128x128xf32> to vector<128x128xbf16>
    %58 = arith.truncf %55 : vector<128x128xf32> to vector<128x128xbf16>
    %59 = tpu.concatenate %56, %57, %58 in 1 : vector<128x128xbf16>, vector<128x128xbf16>, vector<128x128xbf16> -> vector<128x384xbf16>
    %c0_24 = arith.constant 0 : index
    %c0_25 = arith.constant 0 : index
    %60 = vector.load %arg3[%c0_24, %c0_25] : memref<384x128xbf16, #tpu.memory_space<vmem>>, vector<384x128xbf16>
    %cst_26 = arith.constant dense<0.000000e+00> : vector<128x128xf32>
    %61 = tpu.matmul %59, %60, %cst_26 {dimension_numbers = #tpu.dot_dimension_numbers<[1], [0], [0], [1], [0, 0, 1, 1], [], []>} : vector<128x384xbf16>, vector<384x128xbf16>, vector<128x128xf32> -> vector<128x128xf32>
    %62 = arith.addf %61, %0 : vector<128x128xf32>
    %c0_27 = arith.constant 0 : index
    %c0_28 = arith.constant 0 : index
    %63 = vector.load %arg8[%c0_27, %c0_28] : memref<128x128xf32, #tpu.memory_space<vmem>>, vector<128x128xf32>
    tpu.vector_store %arg8[%c0_27, %c0_28], %62 {strides = array<i32>} : memref<128x128xf32, #tpu.memory_space<vmem>>, vector<128x128xf32>,
    return
  }
  func.func @transform_0(%arg0: i32) -> (i32, i32) {
    %c0_i32 = arith.constant 0 : i32
    %c0_i32_0 = arith.constant 0 : i32
    return %arg0, %c0_i32 : i32, i32
  }
  func.func @transform_1(%arg0: i32) -> (i32, i32) {
    %c0_i32 = arith.constant 0 : i32
    %c0_i32_0 = arith.constant 0 : i32
    %c0_i32_1 = arith.constant 0 : i32
    return %c0_i32, %c0_i32_0 : i32, i32
  }
  func.func @transform_2(%arg0: i32) -> (i32, i32) {
    %c0_i32 = arith.constant 0 : i32
    %c0_i32_0 = arith.constant 0 : i32
    %c0_i32_1 = arith.constant 0 : i32
    return %c0_i32, %c0_i32_0 : i32, i32
  }
  func.func @transform_3(%arg0: i32) -> (i32, i32) {
    %c0_i32 = arith.constant 0 : i32
    %c0_i32_0 = arith.constant 0 : i32
    %c0_i32_1 = arith.constant 0 : i32
    return %c0_i32, %c0_i32_0 : i32, i32
  }
  func.func @transform_4(%arg0: i32) -> (i32, i32) {
    %c0_i32 = arith.constant 0 : i32
    %c0_i32_0 = arith.constant 0 : i32
    %c0_i32_1 = arith.constant 0 : i32
    return %c0_i32, %c0_i32_0 : i32, i32
  }
  func.func @transform_5(%arg0: i32) -> (i32, i32) {
    %c0_i32 = arith.constant 0 : i32
    %c0_i32_0 = arith.constant 0 : i32
    %c0_i32_1 = arith.constant 0 : i32
    return %c0_i32, %c0_i32_0 : i32, i32
  }
  func.func @transform_6(%arg0: i32) -> (i32, i32) {
    %c0_i32 = arith.constant 0 : i32
    %c0_i32_0 = arith.constant 0 : i32
    %c0_i32_1 = arith.constant 0 : i32
    return %c0_i32, %c0_i32_0 : i32, i32
  }
  func.func @transform_7(%arg0: i32) -> (i32, i32) {
    %c0_i32 = arith.constant 0 : i32
    %c0_i32_0 = arith.constant 0 : i32
    return %arg0, %c0_i32 : i32, i32
  }
}

</mosaic_0001>

<bundles_post_ra>
// kernel: tpu_custom_call.1
= control target key start
LH: loop header
LB: loop body
LE: loop exit
PB: predicated region body
PF: predicated region fallthrough
CT: control target
= control target key end

     0   :  { %12 = vsyncpa [#allocation3], 0  ;;  %s3572_s0 = inlined_call_operand.hbm [shape: f32[256,128], index: 0, kind: input, shape index: {}]   ;;  %s3573_s1 = inlined_call_operand.hbm [shape: bf16[384,128], index: 1, kind: input, shape index: {}]   ;;  %s3574_s2 = inlined_call_operand.hbm [shape: bf16[384,128], index: 2, kind: input, shape index: {}]   ;;  %s3575_s3 = inlined_call_operand.vmem [shape: f32[1,128], index: 3, kind: input, shape index: {}]   ;;  %s3576_s4 = inlined_call_operand.vmem [shape: f32[1,128], index: 4, kind: input, shape index: {}]   ;;  %s3577_s5 = inlined_call_operand.vmem [shape: f32[1,128], index: 5, kind: input, shape index: {}]   ;;  %s3578_s6 = inlined_call_operand.vmem [shape: f32[1,128], index: 6, kind: input, shape index: {}]   ;;  %s3579_s7 = inlined_call_operand.hbm [shape: f32[256,128], index: 7, kind: output, shape index: {}]  }
   0x1   :  { %14 = vsyncpa [#allocation3 + $0x1], 0 }
   0x2   :  { %15 = vsyncpa [#allocation6], 0 }
   0x3   :  { %16 = vsyncpa [#allocation4], 0 }
   0x4   :  { %18 = vsyncpa [#allocation4 + $0x1], 0  ;;  %s2585_s24 = smov 0   ;;  %s2587_s25 = smov 0  }
   0x5   :  { %s2589_s26 = smov 0   ;;  %s2591_s27 = smov 0  }
   0x6 LB: > { %s2606_s28 = sadd.s32 4294967295, %s2532_s27   ;;  %s1846_s29 = sadd.s32 4294967294, %s2532_s27   ;;  %s2532_s27 = sphi %s2591_s27, %s3679_s27   ;;  %s2528_s26 = sphi %s2589_s26, %s3678_s26   ;;  %s2524_s25 = sphi %s2587_s25, %s3677_s25   ;;  %s2520_s24 = sphi %s2585_s24, %s3676_s24  }
   0x7   : > { %p44_p0 = scmp.ne.s32.totalorder %s2524_s25, %s2520_s24  ;;  %p3580_p1 = scmp.eq.s32.totalorder %s2606_s28, 0 }
   0x8   : > { %p200_p3 = scmp.eq.s32.totalorder %s1846_s29, 1  ;;  %p1847_p5 = scmp.ge.s32.totalorder %s2532_s27, 1 }
   0x9   : > { %p2615_p4 = por %p3580_p1, %p44_p0  ;;  %p207_p7 = scmp.lt.s32.totalorder %s2532_s27, 3 }
   0xa   : > { %p2620_p6 = por %p200_p3, %p44_p0  ;;  %s2534_s10 = smov [#allocation5]  }
   0xb   : > { %s3587_s30 = scalar_select %p2615_p4, 1, 0 }
   0xc   : > { %s3588_s8 = scalar_select %p2620_p6, 1, 0 }
   0xd   : > { %p2625_p8 = pnand %p1847_p5, %p207_p7  ;;  %s219_s11 = sshll.u32 %s2534_s10, 4  ;;  %s2629_s11 = int_to_ptr.vmem [resolvable:$true] %s219_s11 }
   0xe   : > { %s2535_s13 = smov [#allocation7]   ;;  %s2376_s17 = scalar_lea.hbm %s3573_s1, 3072 }
   0xf   : > { %p2250_p9 = pneg %p2625_p8  ;;  %s232_s14 = sshll.u32 %s2535_s13, 4  ;;  %s2640_s14 = int_to_ptr.vmem [resolvable:$true] %s232_s14 }
  0x10   : > { %p2377_p12 = scmp.ne.s32.totalorder %s3573_s1, %s2376_s17  ;;  %p2383_p5 = scmp.lt.u32.totalorder %s2376_s17, %s3573_s1 }
  0x11   : > { %p2636_p11 = pnand %p2250_p9, %p3580_p1 }
  0x13   : > { %p2378_p13 = pneg %p2636_p11 }
  0x15   : > { %p2379_p0 = pnand %p2378_p13, %p2377_p12 }
  0x17   : > { %p2380_p3 = pneg %p2379_p0 }
  0x19   : > { %p2385_p7 = pnand %p2383_p5, %p2380_p3 }
  0x1b   : > { %2388 = shalt.err (!%p2385_p7)
}
  0x1c   : > { %s2389_s22 = scalar_lea.vmem %s2629_s11, 3072  ;;  %p2397_p2 = scmp.lt.s32.totalorder %s2629_s11, %s2629_s11 }
  0x1d   : > { %p2390_p9 = scmp.ne.s32.totalorder %s2629_s11, %s2389_s22  ;;  %p2398_p12 = scmp.lt.s32.totalorder %s2389_s22, %s2389_s22 }
  0x1f   : > { %p2392_p10 = pnand %p2390_p9, %p2378_p13  ;;  %p2399_p0 = por %p2398_p12, %p2397_p2 }
  0x21   : > { %p2393_p1 = pneg %p2392_p10 }
  0x23   : > { %p2400_p6 = pnand %p2399_p0, %p2393_p1 }
  0x25   : > { %2403 = shalt.err (!%p2400_p6)
}
  0x26   : > { %s2536_s23 = smov 64   ;;  %s2537_s29 = smov 4  }
  0x27   : > { %2253 = dma.hbm_to_vmem [thread:$0]  (!%p2636_p11), %s3573_s1, 3072, %s2629_s11, [#allocation6], %s2536_s23, %s2536_s23, %s2537_s29  }
  0x28   : > { %s2404_s17 = scalar_lea.hbm %s3574_s2, 3072 }
  0x29   : > { %p2405_p2 = scmp.ne.s32.totalorder %s3574_s2, %s2404_s17  ;;  %p2411_p10 = scmp.lt.u32.totalorder %s2404_s17, %s3574_s2 }
  0x2b   : > { %p2407_p1 = pnand %p2405_p2, %p2378_p13 }
  0x2d   : > { %p2408_p6 = pneg %p2407_p1 }
  0x2f   : > { %p2413_p3 = pnand %p2411_p10, %p2408_p6 }
  0x31   : > { %2416 = shalt.err (!%p2413_p3)
}
  0x32   : > { %s2417_s11 = scalar_lea.vmem %s2640_s14, 3072  ;;  %p2425_p12 = scmp.lt.s32.totalorder %s2640_s14, %s2640_s14 }
  0x33   : > { %p2418_p5 = scmp.ne.s32.totalorder %s2640_s14, %s2417_s11  ;;  %p2426_p0 = scmp.lt.s32.totalorder %s2417_s11, %s2417_s11 }
  0x35   : > { %p2420_p7 = pnand %p2418_p5, %p2378_p13  ;;  %p2427_p2 = por %p2426_p0, %p2425_p12 }
  0x37   : > { %p2421_p9 = pneg %p2420_p7 }
  0x39   : > { %p2428_p1 = pnand %p2427_p2, %p2421_p9 }
  0x3b   : > { %2431 = shalt.err (!%p2428_p1)
}
  0x3c   : > { %2256 = dma.hbm_to_vmem [thread:$0]  (!%p2636_p11), %s3574_s2, 3072, %s2640_s14, [#allocation6], %s2536_s23, %s2536_s23, %s2537_s29  }
  0x3d   : > { %s2695_s13 = sadd.s32 1, %s2532_s27   ;;  %s31_s12 = sadd.s32 1, %s2528_s26 }
  0x3e   : > { %s28_s15 = ssub.s32 %s2532_s27, %s2695_s13  ;;  %p38_p13 = scmp.ne.s32.totalorder %s2528_s26, %s2524_s25 }
  0x3f   : > { %p29_p6 = scmp.eq.s32.totalorder %s28_s15, 0  ;;  %p39_p10 = scmp.eq.s32.totalorder %s2532_s27, 0 }
  0x40   : > { %p3591_p3 = scmp.eq.s32.totalorder %s2606_s28, 1  ;;  %p2267_p7 = scmp.lt.s32.totalorder %s2532_s27, 2 }
  0x41   : > { %s2711_s17 = scalar_select %p29_p6, %s2528_s26, %s31_s12  }
  0x42   : > { %p2705_p5 = por %p3591_p3, %p38_p13  ;;  %p40_p9 = por %p39_p10, %p38_p13 }
  0x43   : > { %s258_s18 = sand.u32 1, %s2528_s26   ;;  %s2012_s14 = sshll.u32 %s2532_s27, 11 }
  0x44   : > { %s3592_s16 = scalar_select %p2705_p5, 1, 0 }
  0x45   : > { %s1851_s19 = sshll.u32 %s258_s18, 7  ;;  %s2718_s20 = scalar_lea.hbm %s3572_s0, %s2012_s14 }
  0x46   : > { %s262_s21 = scalar_lea.vmem [#allocation2], %s1851_s19  ;;  %p2722_p11 = pnand %p2267_p7, %p40_p9 }
  0x47   : > { %s269_s11 = sshll.u32 %s262_s21, 4  ;;  %s2726_s10 = scalar_lea.sflag [#allocation3], %s258_s18  ;;  %s2720_s11 = int_to_ptr.vmem [resolvable:$true] %s269_s11 }
  0x48   : > { %s2432_s12 = scalar_lea.hbm %s2718_s20, 2048  ;;  %p2434_p0 = pneg %p2722_p11 }
  0x49   : > { %p2433_p12 = scmp.ne.s32.totalorder %s2718_s20, %s2432_s12  ;;  %s2437_s14 = scalar_lea.hbm %s3572_s0, 4096 }
  0x4a   : > { %p2438_p13 = scmp.lt.u32.totalorder %s2718_s20, %s3572_s0  ;;  %p2439_p6 = scmp.lt.u32.totalorder %s2437_s14, %s2432_s12 }
  0x4b   : > { %p2435_p2 = pnand %p2434_p0, %p2433_p12  ;;  %p2441_p3 = scmp.lt.u32.totalorder %s2432_s12, %s2718_s20 }
  0x4c   : > { %p2440_p10 = por %p2439_p6, %p2438_p13 }
  0x4d   : > { %p2436_p1 = pneg %p2435_p2 }
  0x4e   : > { %p2442_p7 = por %p2441_p3, %p2440_p10 }
  0x50   : > { %p2443_p9 = pnand %p2442_p7, %p2436_p1 }
  0x52   : > { %2446 = shalt.err (!%p2443_p9)
}
  0x53   : > { %s2447_s18 = scalar_lea.vmem %s2720_s11, 2048  ;;  %s2538_s21 = smov [#allocation2]  }
  0x54   : > { %p2448_p12 = scmp.ne.s32.totalorder %s2720_s11, %s2447_s18  ;;  %s2452_s15 = sshll.u32 %s2538_s21, 4  ;;  %s2453_s15 = int_to_ptr.vmem [resolvable:$false] %s2452_s15 }
  0x55   : > { %s2454_s19 = scalar_lea.vmem %s2453_s15, 4096  ;;  %p2455_p4 = scmp.lt.s32.totalorder %s2720_s11, %s2453_s15 }
  0x56   : > { %p2450_p2 = pnand %p2448_p12, %p2434_p0  ;;  %p2456_p13 = scmp.lt.s32.totalorder %s2454_s19, %s2447_s18 }
  0x58   : > { %p2451_p5 = pneg %p2450_p2  ;;  %p2457_p6 = por %p2456_p13, %p2455_p4 }
  0x5a   : > { %p2458_p10 = pnand %p2457_p6, %p2451_p5 }
  0x5c   : > { %2461 = shalt.err (!%p2458_p10)
}
  0x5d   : > { %s2539_s12 = smov 128   ;;  %s2540_s14 = smov 8  }
  0x5e   : > { %2260 = dma.hbm_to_vmem [thread:$0]  (!%p2722_p11), %s2718_s20, 2048, %s2720_s11, %s2726_s10, %s2539_s12, %s2539_s12, %s2540_s14  }
  0x5f   : > { %281 = sbr.rel (%p2625_p8) target bundleno = 717 (0x2cd), region = 48  ;;  %s2757_s23 = sand.u32 (!%p2625_p8), 1, %s2524_s25  }
  0x60   : > { %s1855_s29 = sshll.u32 (!%p2625_p8), %s2757_s23, 7  ;;  %s284_s18 = scalar_lea.sflag (!%p2625_p8), [#allocation3], %s2757_s23 }
  0x61   : > { %s2763_s21 = scalar_lea.vmem (!%p2625_p8), [#allocation2], %s1855_s29  ;;  %p3594_p4 = scmp.ne.s32.totalorder (!%p2625_p8), %s3587_s30, 0 }
  0x66   : > { %2507 = dma.done.wait (%p3594_p4), %s284_s18, 2048  }
  0x67   : > { %2509 = vsyncadd (%p3594_p4), %s284_s18, 4294965248  ;;  %p3595_p5 = scmp.eq.s32.totalorder %s2606_s28, 0 }
  0x69   : > { %2511 = dma.done.wait (%p3595_p5), [#allocation6], 6144   ;;  %p3596_p8 = pmov %p3595_p5 }
  0x6a   : > { %v2312_v0 = vld [vmem:[#allocation5 + $0x40] sm:$0xff]   ;;  %v2315_v3 = vld [vmem:[#allocation5 + $0x48] sm:$0xff]   ;;  %v345_v6 = vlaneseq  ;;  %v2318_v7 = vld [vmem:[#allocation5 + $0x50] sm:$0xff]   ;;  %vm2541_vm7 = vmmov 1   ;;  %s3479_s12 = scalar_lea.vmem [#allocation8], %s1855_s29  ;;  %s2013_s14 = sshll.u32 %s2606_s28, 11 }
  0x6b   : > { %2513 = vsyncadd (%p3596_p8), [#allocation6], 4294961152  ;;  %v2313_v1 = vld [vmem:[#allocation5] sm:$0xff]   ;;  %2014 = vmatprep.subr.bf16.mxu0 %v2312_v0  ;;  %v2316_v4 = vld [vmem:[#allocation5 + $0x8] sm:$0xff]   ;;  %s1754_s29 = sshll.u32 %s3479_s12, 4  ;;  %s3523_s9 = scalar_lea.hbm %s3579_s7, %s2013_s14  ;;  %s3525_s29 = int_to_ptr.vmem [resolvable:$true] %s1754_s29 }
  0x6c   : > { %v2314_v2 = vld [vmem:[#allocation5 + $0x80] sm:$0xff]   ;;  %2015 = vmatpush3.bf16.msra.mxu0 %v2313_v1  ;;  %v2317_v5 = vld [vmem:[#allocation5 + $0x88] sm:$0xff]   ;;  %v2319_v8 = vld [vmem:[#allocation5 + $0x10] sm:$0xff]   ;;  %v2773_v11 = vshrl.u32 %v345_v6, 7  ;;  %s1741_s28 = scalar_lea.sflag [#allocation4], %s2757_s23  ;;  %s2462_s20 = scalar_lea.vmem %s3525_s29, 2048 }
  0x6d   : > { %2174 = vmatprep.subr.bf16.mxu1 %v2314_v2  ;;  %2016 = vmatprep.subr.bf16.mxu0 %v2315_v3  ;;  %v2320_v9 = vld [vmem:[#allocation5 + $0x90] sm:$0xff]   ;;  %v2321_v10 = vld [vmem:[#allocation5 + $0x58] sm:$0xff]   ;;  %v2324_v14 = vld [vmem:[#allocation5 + $0x60] sm:$0xff]   ;;  %p2463_p11 = scmp.ne.s32.totalorder %s3525_s29, %s2462_s20  ;;  %p3673_p0 = scmp.ne.s32.totalorder %s3592_s16, 0 }
  0x6e   : > { %2175 = vmatpush3.bf16.msra.mxu1 %v2314_v2  ;;  %v2322_v12 = vld [vmem:[#allocation5 + $0x18] sm:$0xff]   ;;  %v366_v15 = vand.u32 15, %v2773_v11  ;;  %v2326_v16 = vld [vmem:[#allocation5 + $0xa0] sm:$0xff]   ;;  %v347_v17 = vadd.s32 8, %v2773_v11  ;;  %v349_v19 = vadd.s32 24, %v2773_v11  ;;  %v2327_v20 = vld [vmem:[#allocation5 + $0x68] sm:$0xff]  }
  0x6f   : > { %2176 = vmatprep.subr.bf16.mxu1 %v2317_v5  ;;  %v2323_v13 = vld [vmem:[#allocation5 + $0x98] sm:$0xff]   ;;  %v2325_v18 = vld [vmem:[#allocation5 + $0x20] sm:$0xff]   ;;  %v348_v21 = vadd.s32 16, %v2773_v11  ;;  %v2780_v22 = vadd.s32 32, %v2773_v11  ;;  %v2783_v23 = vadd.s32 40, %v2773_v11  ;;  %v2329_v24 = vld [vmem:[#allocation5 + $0xa8] sm:$0xff]   ;;  %p2464_p1 = pnand %p2463_p11, %p3673_p0 }
  0x70   : > { %2017 = vmatpush3.bf16.msra.mxu0 %v2316_v4  ;;  %v373_v25 = vand.u32 15, %v347_v17  ;;  %v2328_v26 = vld [vmem:[#allocation5 + $0x28] sm:$0xff]   ;;  %v2786_v27 = vadd.s32 56, %v2773_v11  ;;  %v2330_v28 = vld [vmem:[#allocation5 + $0x70] sm:$0xff]   ;;  %v2789_v29 = vadd.s32 48, %v2773_v11  ;;  %vm2791_vm0 = vcmp.ge.s32.totalorder %v366_v15, 1 }
  0x71   : > { %2018 = vmatprep.subr.bf16.mxu0 %v2318_v7  ;;  %v2331_v30 = vld [vmem:[#allocation5 + $0x30] sm:$0xff]   ;;  %v387_v32 = vand.u32 15, %v349_v19  ;;  %vm664_vm1 = vcmp.lt.s32.totalorder %v2773_v11, 1  ;;  %v2797_v34 = vadd.s32 72, %v2773_v11  ;;  %v2333_v35 = vld [vmem:[#allocation5 + $0x78] sm:$0xff]   ;;  %vm3583_vm3 = vcmp.lt.s32.totalorder %v2773_v11, 7  ;;  %vm2867_vm8 = vmpackc.low %vm2541_vm7, %vm2791_vm0  ;;  %p2465_p3 = pneg %p2464_p1 }
  0x72   : > { %2177 = vmatpush3.bf16.msra.mxu1 %v2317_v5  ;;  %v2332_v33 = vld [vmem:[#allocation5 + $0xb0] sm:$0xff]   ;;  %vm2799_vm2 = vcmp.lt.s32.totalorder %v373_v25, 15  ;;  %v329_v37 = vld [vmem:[%s2763_s21] sm:$0xff]  ;;  %v330_v38 = vld [vmem:[%s2763_s21 + $0x8] sm:$0xff]  ;;  %v380_v40 = vand.u32 15, %v348_v21  ;;  %v2812_v41 = vadd.s32 88, %v2773_v11 }
  0x73   : > { %2178 = vmatprep.subr.bf16.mxu1 %v2320_v9  ;;  %v2809_v39 = vld [vmem:[%s3575_s3] ss:$0 sm:$0xff]  ;;  %v344_v45 = vld [vmem:[%s2763_s21 + $0x78] sm:$0xff]  ;;  %vm2822_vm4 = vcmp.lt.s32.totalorder %v387_v32, 15  ;;  %v394_v47 = vand.u32 15, %v2780_v22  ;;  %v331_v50 = vld [vmem:[%s2763_s21 + $0x10] sm:$0xff] }
  0x74   : > { %2019 = vmatpush3.bf16.msra.mxu0 %v2319_v8  ;;  %v593_v42 = vmul.f32 %v2809_v39, %v329_v37  ;;  %v594_v43 = vmul.f32 %v2809_v39, %v330_v38  ;;  %v2819_v44 = vld [vmem:[%s3576_s4] ss:$0 sm:$0xff]  ;;  %v2335_v48 = vld [vmem:[#allocation5 + $0xb8] sm:$0xff]   ;;  %v608_v49 = vmul.f32 %v2809_v39, %v344_v45  ;;  %v401_v52 = vand.u32 15, %v2783_v23  ;;  %v334_v61 = vld [vmem:[%s2763_s21 + $0x28] sm:$0xff] }
  0x75   : > { %2020 = vmatprep.subr.bf16.mxu0 %v2321_v10  ;;  %v332_v51 = vld [vmem:[%s2763_s21 + $0x18] sm:$0xff]  ;;  %v415_v53 = vand.u32 15, %v2786_v27  ;;  %v429_v54 = vand.u32 15, %v2797_v34  ;;  %v595_v58 = vmul.f32 %v2809_v39, %v331_v50  ;;  %v333_v59 = vld [vmem:[%s2763_s21 + $0x20] sm:$0xff]  ;;  %vm2841_vm5 = vcmp.ge.s32.totalorder %v380_v40, 1  ;;  %v335_v2 = vld [vmem:[%s2763_s21 + $0x30] sm:$0xff] }
  0x76   : > { %2179 = vmatpush3.bf16.msra.mxu1 %v2320_v9  ;;  %v2334_v55 = vld [vmem:[#allocation5 + $0x38] sm:$0xff]   ;;  %v616_v56 = vadd.f32 %v2819_v44, %v593_v42  ;;  %v617_v57 = vadd.f32 %v2819_v44, %v594_v43  ;;  %v596_v60 = vmul.f32 %v2809_v39, %v332_v51  ;;  %v631_v62 = vadd.f32 %v2819_v44, %v608_v49  ;;  %vm2879_vm9 = vmpackc.low %vm2799_vm2, %vm2541_vm7  ;;  %v337_v43 = vld [vmem:[%s2763_s21 + $0x40] sm:$0xff] }
  0x77   : > { %2180 = vmatprep.subr.bf16.mxu1 %v2323_v13  ;;  %v597_v63 = vmul.f32 %v2809_v39, %v333_v59  ;;  %v598_v1 = vmul.f32 %v2809_v39, %v334_v61  ;;  %v443_v3 = vand.u32 15, %v2812_v41  ;;  %v618_v6 = vadd.f32 %v2819_v44, %v595_v58  ;;  %v336_v34 = vld [vmem:[%s2763_s21 + $0x38] sm:$0xff]  ;;  %vm2903_vm11 = vmpackc.low %vm2822_vm4, %vm2541_vm7  ;;  %v338_v50 = vld [vmem:[%s2763_s21 + $0x48] sm:$0xff] }
  0x78   : > { %2021 = vmatpush3.bf16.msra.mxu0 %v2322_v12  ;;  %v2848_v4 = vmax.f32 %v616_v56, 0.0  ;;  %v633_v5 = vmax.f32 %v617_v57, 0.0  ;;  %v619_v7 = vadd.f32 %v2819_v44, %v596_v60  ;;  %v2852_v8 = vmax.f32 %v631_v62, 0.0  ;;  %v339_v56 = vld [vmem:[%s2763_s21 + $0x50] sm:$0xff]  ;;  %vm2936_vm13 = vmpackc.low %vm2541_vm7, %vm2841_vm5  ;;  %v341_v12 = vld [vmem:[%s2763_s21 + $0x60] sm:$0xff] }
  0x79   : > { %2022 = vmatprep.subr.bf16.mxu0 %v2324_v14  ;;  %v620_v9 = vadd.f32 %v2819_v44, %v597_v63  ;;  %v621_v10 = vadd.f32 %v2819_v44, %v598_v1  ;;  %vm2856_vm6 = vcmp.lt.s32.totalorder %v401_v52, 15  ;;  %v634_v17 = vmax.f32 %v618_v6, 0.0 }
  0x7a   : > { %2181 = vmatpush3.bf16.msra.mxu1 %v2323_v13  ;;  %v599_v13 = vmul.f32 %v2809_v39, %v335_v2  ;;  %v648_v14 = vrot.slane %v2848_v4, 7  ;;  %v649_v15 = vrot.slane %v633_v5, 7  ;;  %v698_v21 = vrot.slane %v633_v5, 1  ;;  %vm2962_vm15 = vmpackc.low %vm2856_vm6, %vm2541_vm7 }
  0x7b   : > { %2182 = vmatprep.subr.bf16.mxu1 %v2326_v16  ;;  %v2872_v23 = vmax.f32 %v619_v7, 0.0  ;;  %v699_v25 = vrot.slane %v634_v17, 1  ;;  %v636_v27 = vmax.f32 %v620_v9, 0.0  ;;  %vm2894_vm10 = vcmp.lt.s32.totalorder %v415_v53, 15 }
  0x7c   : > { %2023 = vmatpush3.bf16.msra.mxu0 %v2325_v18  ;;  %v663_v18 = vrot.slane %v2852_v8, 7  ;;  %v2911_v49 = vmax.f32 %v621_v10, 0.0  ;;  %vm2914_vm12 = vcmp.lt.s32.totalorder %v429_v54, 15  ;;  %v2931_v58 = vadd.s32 104, %v2773_v11  ;;  %vm2991_vm0 = vmpackc.low %vm2894_vm10, %vm2541_vm7 }
  0x7d   : > { %2024 = vmatprep.subr.bf16.mxu0 %v2327_v20  ;;  %v697_v20 = vrot.slane %v2848_v4, 1  ;;  %v700_v32 = vrot.slane %v2872_v23, 1  ;;  %v727_v37 = vsel %vm3583_vm3, %v698_v21, %v699_v25  ;;  %v701_v38 = vrot.slane %v636_v27, 1  ;;  %vm3012_vm2 = vmpackc.low %vm2914_vm12, %vm2541_vm7 }
  0x7e   : > { %2183 = vmatpush3.bf16.msra.mxu1 %v2326_v16  ;;  %v754_v16 = vpack.c.bf16 %v633_v5, %v2848_v4  ;;  %v651_v42 = vrot.slane %v2872_v23, 7  ;;  %v652_v57 = vrot.slane %v636_v27, 7  ;;  %vm2942_vm14 = vcmp.ge.s32.totalorder %v394_v47, 1 }
  0x7f   : > { %2184 = vmatprep.subr.bf16.mxu1 %v2329_v24  ;;  %v728_v31 = vsel %vm3583_vm3, %v697_v20, %v698_v21  ;;  %v725_v46 = vsel %vm3583_vm3, %v700_v32, %v701_v38  ;;  %v702_v62 = vrot.slane %v2911_v49, 1  ;;  %v600_v63 = vmul.f32 %v2809_v39, %v336_v34  ;;  %vm3027_vm4 = vmpackc.low %vm2541_vm7, %vm2942_vm14 }
  0x80   : > { %2025 = vmatpush3.bf16.msra.mxu0 %v2328_v26  ;;  %994 = vmatprep.mubr.bf16.mxu0 %v754_v16  ;;  %v1910_v45 = vpack.c.bf16 %v727_v37, %v728_v31  ;;  %v601_v1 = vmul.f32 %v2809_v39, %v337_v43  ;;  %v602_v22 = vmul.f32 %v2809_v39, %v338_v50  ;;  %v653_v2 = vrot.slane %v2911_v49, 7  ;;  %v340_v16 = vld [vmem:[%s2763_s21 + $0x58] sm:$0xff] }
  0x81   : > { %2026 = vmatprep.subr.bf16.mxu0 %v2330_v28  ;;  %v650_v28 = vrot.slane %v634_v17, 7  ;;  %v603_v47 = vmul.f32 %v2809_v39, %v339_v56  ;;  %v724_v6 = vsel %vm3583_vm3, %v701_v38, %v702_v62  ;;  %v623_v9 = vadd.f32 %v2819_v44, %v600_v63  ;;  %v342_v38 = vld [vmem:[%s2763_s21 + $0x68] sm:$0xff] }
  0x82   : > { %2185 = vmatpush3.bf16.msra.mxu1 %v2329_v24  ;;  %v679_v24 = vsel %vm664_vm1, %v648_v14, %v649_v15  ;;  %2190 = vmatprep.mubr.msk.bf16.mxu1 %vm2879_vm9, %v1910_v45  ;;  %v756_v10 = vpack.c.bf16 %v2911_v49, %v636_v27  ;;  %v675_v27 = vsel %vm664_vm1, %v652_v57, %v653_v2  ;;  %vm3043_vm5 = vcmp.lt.s32.totalorder %v443_v3, 15 }
  0x83   : > { %2186 = vmatprep.subr.bf16.mxu1 %v2332_v33  ;;  %v677_v52 = vsel %vm664_vm1, %v650_v28, %v651_v42  ;;  %v678_v53 = vsel %vm664_vm1, %v649_v15, %v650_v28  ;;  %v626_v15 = vadd.f32 %v2819_v44, %v603_v47  ;;  %v2974_v21 = vmax.f32 %v623_v9, 0.0  ;;  %vm3077_vm10 = vmpackc.low %vm3043_vm5, %vm2541_vm7 }
  0x84   : > { %2027 = vmatpush3.bf16.msra.mxu0 %v2331_v30  ;;  %v680_v30 = vsel %vm664_vm1, %v663_v18, %v648_v14  ;;  %v1889_v0 = vpack.c.bf16 %v677_v52, %v678_v53  ;;  %v625_v14 = vadd.f32 %v2819_v44, %v602_v22  ;;  %v676_v28 = vsel %vm664_vm1, %v651_v42, %v652_v57 }
  0x85   : > { %2028 = vmatprep.subr.bf16.mxu0 %v2333_v35  ;;  %v1886_v36 = vpack.c.bf16 %v679_v24, %v680_v30  ;;  %v704_v30 = vrot.slane %v2974_v21, 1  ;;  %v605_v37 = vmul.f32 %v2809_v39, %v341_v12  ;;  %v343_v35 = vld [vmem:[%s2763_s21 + $0x70] sm:$0xff]  ;;  %v1892_v49 = vpack.c.bf16 %v675_v27, %v676_v28 }
  0x86   : > { %2187 = vmatpush3.bf16.msra.mxu1 %v2332_v33  ;;  %v755_v33 = vpack.c.bf16 %v2872_v23, %v634_v17  ;;  %v655_v56 = vrot.slane %v2974_v21, 7  ;;  %v606_v63 = vmul.f32 %v2809_v39, %v342_v38  ;;  %v607_v60 = vmul.f32 %v2809_v39, %v343_v35 }
  0x87   : > { %2188 = vmatprep.subr.bf16.mxu1 %v2335_v48 }
  0x88   : > { %2029 = vmatpush3.bf16.msra.mxu0 %v2334_v55  ;;  %v622_v55 = vadd.f32 %v2819_v44, %v599_v13  ;;  %v624_v13 = vadd.f32 %v2819_v44, %v601_v1  ;;  %v630_v47 = vadd.f32 %v2819_v44, %v607_v60 }
  0x8a   : > { %2189 = vmatpush3.bf16.msra.mxu1 %v2335_v48  ;;  %v726_v48 = vsel %vm3583_vm3, %v699_v25, %v700_v32  ;;  %v2946_v61 = vmax.f32 %v622_v55, 0.0  ;;  %v2977_v24 = vmax.f32 %v624_v13, 0.0  ;;  %v2979_v25 = vmax.f32 %v625_v14, 0.0 }
  0x8b   : > { %1887 = vmatmul.mubr.msk.bf16.vlgmr.msra.gmra.mrb[0].mxu0 %vm2867_vm8, %v1886_v36  ;;  %v1913_v54 = vpack.c.bf16 %v725_v46, %v726_v48  ;;  %v2995_v32 = vmax.f32 %v626_v15, 0.0  ;;  %v604_v36 = vmul.f32 %v2809_v39, %v340_v16  ;;  %v457_v39 = vand.u32 15, %v2931_v58 }
  0x8c   : > { %1002 = vmatprep.mubr.bf16.mxu0 %v755_v33  ;;  %v703_v5 = vrot.slane %v2946_v61, 1  ;;  %v705_v33 = vrot.slane %v2977_v24, 1  ;;  %v654_v34 = vrot.slane %v2946_v61, 7  ;;  %v706_v43 = vrot.slane %v2979_v25, 1 }
  0x8d   : > { %2191 = vmatmul.mubr.msk.bf16.vlgmr.msra.gmra.mrb[0].mxu1 %vm2903_vm11, %v1913_v54  ;;  %v707_v45 = vrot.slane %v2995_v32, 1  ;;  %v757_v52 = vpack.c.bf16 %v2974_v21, %v2946_v61  ;;  %v627_v57 = vadd.f32 %v2819_v44, %v604_v36  ;;  %v628_v61 = vadd.f32 %v2819_v44, %v605_v37 }
  0x8e   : > { %v723_v17 = vsel %vm3583_vm3, %v702_v62, %v703_v5  ;;  %v722_v42 = vsel %vm3583_vm3, %v703_v5, %v704_v30  ;;  %v721_v50 = vsel %vm3583_vm3, %v704_v30, %v705_v33  ;;  %v720_v55 = vsel %vm3583_vm3, %v705_v33, %v706_v43 }
  0x8f   : > { %v1916_v23 = vpack.c.bf16 %v723_v17, %v724_v6  ;;  %v1919_v46 = vpack.c.bf16 %v721_v50, %v722_v42  ;;  %v719_v53 = vsel %vm3583_vm3, %v706_v43, %v707_v45  ;;  %v408_v62 = vand.u32 15, %v2789_v29 }
  0x90   : > { %v1922_v54 = vpack.c.bf16 %v719_v53, %v720_v55  ;;  %v3047_v1 = vmax.f32 %v627_v57, 0.0  ;;  %v3049_v22 = vmax.f32 %v628_v61, 0.0  ;;  %v629_v29 = vadd.f32 %v2819_v44, %v606_v63 }
  0x91   : > { %2194 = vmatprep.mubr.msk.bf16.mxu1 %vm2962_vm15, %v1916_v23  ;;  %v361_v5 = vadd.s32 120, %v2773_v11  ;;  %v673_v41 = vsel %vm664_vm1, %v654_v34, %v655_v56  ;;  %v674_v3 = vsel %vm664_vm1, %v653_v2, %v654_v34  ;;  %vm560_vm6 = vcmp.ge.s32.totalorder %v408_v62, 1 }
  0x92   : > { %v708_v6 = vrot.slane %v3047_v1, 1  ;;  %v709_v9 = vrot.slane %v3049_v22, 1  ;;  %v3064_v13 = vmax.f32 %v629_v29, 0.0  ;;  %v3066_v58 = vmax.f32 %v630_v47, 0.0  ;;  %vm3083_vm14 = vmpackc.low %vm2541_vm7, %vm560_vm6 }
  0x93   : > { %1890 = vmatmul.mubr.msk.bf16.gmra.mrb[4].mxu0 %vm2936_vm13, %v1889_v0  ;;  %v758_v44 = vpack.c.bf16 %v2979_v25, %v2977_v24  ;;  %v712_v16 = vrot.slane %v2852_v8, 1  ;;  %v1895_v17 = vpack.c.bf16 %v673_v41, %v674_v3  ;;  %vm583_vm12 = vcmp.lt.s32.totalorder %v457_v39, 15 }
  0x94   : > { %1010 = vmatprep.mubr.bf16.mxu0 %v756_v10  ;;  %v354_v10 = vadd.s32 64, %v2773_v11  ;;  %v717_v14 = vsel %vm3583_vm3, %v708_v6, %v709_v9  ;;  %v718_v2 = vsel %vm3583_vm3, %v707_v45, %v708_v6  ;;  %v471_v12 = vand.u32 15, %v361_v5  ;;  %vm3098_vm5 = vmpackc.low %vm583_vm12, %vm2541_vm7 }
  0x95   : > { %2195 = vmatmul.mubr.msk.bf16.gmra.mrb[4].mxu1 %vm2991_vm0, %v1919_v46  ;;  %v1925_v21 = vpack.c.bf16 %v717_v14, %v718_v2  ;;  %v3633_v23 = vmov 0  ;;  %v656_v27 = vrot.slane %v2977_v24, 7  ;;  %v657_v28 = vrot.slane %v2979_v25, 7  ;;  %v2340_v14 = vld [vmem:[#allocation7 + $0xa0] sm:$0xff]   ;;  %v2341_v2 = vld [vmem:[#allocation7 + $0xa8] sm:$0xff]  }
  0x96   : > { %2198 = vmatprep.mubr.msk.bf16.mxu1 %vm3012_vm2, %v1922_v54  ;;  %v3634_v23 = vsel %vm3083_vm14, 4294967295, %v3633_v23  ;;  %v710_v30 = vrot.slane %v3064_v13, 1  ;;  %v711_v33 = vrot.slane %v3066_v58, 1  ;;  %v422_v34 = vand.u32 15, %v354_v10 }
  0x97   : > { %v729_v25 = vsel %vm3583_vm3, %v712_v16, %v697_v20  ;;  %vm585_vm6 = vcmp.lt.s32.totalorder %v471_v12, 15  ;;  %v671_v42 = vsel %vm664_vm1, %v656_v27, %v657_v28  ;;  %v672_v43 = vsel %vm664_vm1, %v655_v56, %v656_v27  ;;  %v2345_v12 = vld [vmem:[#allocation7] sm:$0xff]   ;;  %v2346_v27 = vld [vmem:[#allocation7 + $0x48] sm:$0xff]  }
  0x98   : > { %v715_v36 = vsel %vm3583_vm3, %v710_v30, %v711_v33  ;;  %v716_v37 = vsel %vm3583_vm3, %v709_v9, %v710_v30  ;;  %v714_v24 = vsel %vm3583_vm3, %v711_v33, %v712_v16  ;;  %vm562_vm12 = vcmp.ge.s32.totalorder %v422_v34, 1  ;;  %vm3118_vm3 = vmpackc.low %vm585_vm6, %vm2541_vm7  ;;  %v2342_v16 = vld [vmem:[#allocation7 + $0xb0] sm:$0xff]   ;;  %v2350_v34 = vld [vmem:[#allocation7 + $0x58] sm:$0xff]  }
  0x99   : > { %v1928_v35 = vpack.c.bf16 %v715_v36, %v716_v37  ;;  %v356_v45 = vadd.s32 80, %v2773_v11  ;;  %v1931_v4 = vpack.c.bf16 %v729_v25, %v714_v24  ;;  %v3639_v50 = vmov 0  ;;  %v2348_v30 = vld [vmem:[#allocation7 + $0x50] sm:$0xff]   ;;  %v2351_v36 = vld [vmem:[#allocation7 + $0x18] sm:$0xff]   ;;  %v2352_v37 = vld [vmem:[#allocation7 + $0x60] sm:$0xff]  }
  0x9a   : > { %v759_v46 = vpack.c.bf16 %v3047_v1, %v2995_v32  ;;  %v659_v53 = vrot.slane %v3047_v1, 7  ;;  %v358_v57 = vadd.s32 96, %v2773_v11  ;;  %v3641_v61 = vmov 0  ;;  %v2349_v33 = vld [vmem:[#allocation7 + $0x10] sm:$0xff]   ;;  %v2353_v24 = vld [vmem:[#allocation7 + $0x20] sm:$0xff]   ;;  %v2354_v25 = vld [vmem:[#allocation7 + $0x68] sm:$0xff]  }
  0x9b   : > { %1893 = vmatmul.mubr.msk.bf16.gmra.mrb[8].mxu0 %vm3027_vm4, %v1892_v49  ;;  %v1898_v49 = vpack.c.bf16 %v671_v42, %v672_v43  ;;  %v436_v55 = vand.u32 15, %v356_v45  ;;  %v760_v62 = vpack.c.bf16 %v3064_v13, %v3049_v22  ;;  %v660_v63 = vrot.slane %v3049_v22, 7  ;;  %v2356_v42 = vld [vmem:[#allocation7 + $0x70] sm:$0xff]   ;;  %v2358_v45 = vld [vmem:[#allocation7 + $0x78] sm:$0xff]  }
  0x9c   : > { %1018 = vmatprep.mubr.bf16.mxu0 %v757_v52  ;;  %v658_v52 = vrot.slane %v2995_v32, 7  ;;  %v661_v60 = vrot.slane %v3064_v13, 7  ;;  %v450_v0 = vand.u32 15, %v358_v57  ;;  %v360_v39 = vadd.s32 112, %v2773_v11  ;;  %v2357_v43 = vld [vmem:[#allocation7 + $0x30] sm:$0xff]  }
  0x9d   : > { %2199 = vmatmul.mubr.msk.bf16.gmra.mrb[8].mxu1 %vm3077_vm10, %v1925_v21  ;;  %vm564_vm6 = vcmp.ge.s32.totalorder %v436_v55, 1  ;;  %v668_v29 = vsel %vm664_vm1, %v659_v53, %v660_v63  ;;  %v761_v5 = vpack.c.bf16 %v2852_v8, %v3066_v58  ;;  %v662_v41 = vrot.slane %v3066_v58, 7  ;;  %v2336_v58 = vld [vmem:[#allocation7 + $0x80] sm:$0xff]   ;;  %v2337_v8 = vld [vmem:[#allocation7 + $0x88] sm:$0xff]  }
  0x9e   : > { %2202 = vmatprep.mubr.msk.bf16.mxu1 %vm3098_vm5, %v1928_v35  ;;  %v669_v56 = vsel %vm664_vm1, %v658_v52, %v659_v53  ;;  %v670_v54 = vsel %vm664_vm1, %v657_v28, %v658_v52  ;;  %v667_v1 = vsel %vm664_vm1, %v660_v63, %v661_v60  ;;  %v464_v3 = vand.u32 15, %v360_v39  ;;  %2206 = vmatprep.subr.bf16.mxu0 %v2336_v58  ;;  %v2344_v21 = vld [vmem:[#allocation7 + $0x40] sm:$0xff]   ;;  %v2347_v28 = vld [vmem:[#allocation7 + $0x8] sm:$0xff]  }
  0x9f   : > { %v1901_v32 = vpack.c.bf16 %v669_v56, %v670_v54  ;;  %v1904_v47 = vpack.c.bf16 %v667_v1, %v668_v29  ;;  %v665_v6 = vsel %vm664_vm1, %v662_v41, %v663_v18  ;;  %v666_v9 = vsel %vm664_vm1, %v661_v60, %v662_v41  ;;  %2207 = vmatpush3.bf16.msra.mxu0 %v2336_v58  ;;  %v2338_v18 = vld [vmem:[#allocation7 + $0x90] sm:$0xff]   ;;  %v2355_v35 = vld [vmem:[#allocation7 + $0x28] sm:$0xff]   ;;  %v3187_v60 = vld [vmem:[%s3578_s6] ss:$0 sm:$0xff] }
  0xa0   : > { %v1907_v10 = vpack.c.bf16 %v665_v6, %v666_v9  ;;  %2208 = vmatprep.subr.bf16.mxu0 %v2337_v8  ;;  %2094 = vmatprep.subr.bf16.mxu1 %v2344_v21 }
  0xa1   : > { %2095 = vmatpush3.bf16.msra.mxu1 %v2345_v12 }
  0xa2   : > { %2096 = vmatprep.subr.bf16.mxu1 %v2346_v27 }
  0xa3   : > { %1896 = vmatmul.mubr.msk.bf16.gmra.mrb[12].mxu0 %vm3083_vm14, %v1895_v17  ;;  %vm3123_vm14 = vmpackc.low %vm2541_vm7, %vm562_vm12  ;;  %v2343_v17 = vld [vmem:[#allocation7 + $0xb8] sm:$0xff]  }
  0xa4   : > { %1026 = vmatprep.mubr.bf16.mxu0 %v758_v44  ;;  %v3640_v50 = vsel %vm3123_vm14, 4294967295, %v3639_v50  ;;  %vm3141_vm12 = vmpackc.low %vm2541_vm7, %vm564_vm6  ;;  %vm566_vm6 = vcmp.ge.s32.totalorder %v450_v0, 1  ;;  %2209 = vmatpush3.bf16.msra.mxu0 %v2337_v8  ;;  %v2339_v44 = vld [vmem:[#allocation7 + $0x98] sm:$0xff]  }
  0xa5   : > { %2203 = vmatmul.mubr.msk.bf16.gmra.mrb[12].mxu1 %vm3118_vm3, %v1931_v4  ;;  %v3642_v61 = vsel %vm3141_vm12, 4294967295, %v3641_v61  ;;  %2210 = vmatprep.subr.bf16.mxu0 %v2338_v18  ;;  %v2359_v4 = vld [vmem:[#allocation7 + $0x38] sm:$0xff]  }
  0xa6   : > { %2097 = vmatpush3.bf16.msra.mxu1 %v2347_v28 }
  0xa7   : > { %2098 = vmatprep.subr.bf16.mxu1 %v2348_v30 }
  0xa8   : > { %2211 = vmatpush3.bf16.msra.mxu0 %v2338_v18 }
  0xa9   : > { %2212 = vmatprep.subr.bf16.mxu0 %v2339_v44 }
  0xaa   : > { %2099 = vmatpush3.bf16.msra.mxu1 %v2349_v33 }
  0xab   : > { %1899 = vmatmul.mubr.msk.bf16.gmra.mrb[16].mxu0 %vm3123_vm14, %v1898_v49  ;;  %vm3157_vm14 = vmpackc.low %vm2541_vm7, %vm566_vm6  ;;  %vm568_vm6 = vcmp.ge.s32.totalorder %v464_v3, 1  ;;  %2100 = vmatprep.subr.bf16.mxu1 %v2350_v34 }
  0xac   : > { %1034 = vmatprep.mubr.bf16.mxu0 %v759_v46  ;;  %2213 = vmatpush3.bf16.msra.mxu0 %v2339_v44 }
  0xad   : > { %2214 = vmatprep.subr.bf16.mxu0 %v2340_v14 }
  0xae   : > { %2101 = vmatpush3.bf16.msra.mxu1 %v2351_v36 }
  0xaf   : > { %2102 = vmatprep.subr.bf16.mxu1 %v2352_v37 }
  0xb0   : > { %2215 = vmatpush3.bf16.msra.mxu0 %v2340_v14 }
  0xb1   : > { %2216 = vmatprep.subr.bf16.mxu0 %v2341_v2 }
  0xb2   : > { %2103 = vmatpush3.bf16.msra.mxu1 %v2353_v24 }
  0xb3   : > { %1902 = vmatmul.mubr.msk.bf16.gmra.mrb[20].mxu0 %vm3141_vm12, %v1901_v32  ;;  %vm3173_vm12 = vmpackc.low %vm2541_vm7, %vm568_vm6  ;;  %2104 = vmatprep.subr.bf16.mxu1 %v2354_v25  ;;  %v3182_v32 = vld [vmem:[%s3577_s5] ss:$0 sm:$0xff]  ;;  %vm3647_vm7 = vcmp.lt.s32.totalorder %v2773_v11, 7 }
  0xb4   : > { %1042 = vmatprep.mubr.bf16.mxu0 %v760_v62  ;;  %2217 = vmatpush3.bf16.msra.mxu0 %v2341_v2  ;;  %vm3648_vm6 = vmmov %vm3647_vm7 }
  0xb5   : > { %2218 = vmatprep.subr.bf16.mxu0 %v2342_v16 }
  0xb6   : > { %2105 = vmatpush3.bf16.msra.mxu1 %v2355_v35 }
  0xb7   : > { %2106 = vmatprep.subr.bf16.mxu1 %v2356_v42 }
  0xb8   : > { %2219 = vmatpush3.bf16.msra.mxu0 %v2342_v16 }
  0xb9   : > { %2220 = vmatprep.subr.bf16.mxu0 %v2343_v17 }
  0xba   : > { %2107 = vmatpush3.bf16.msra.mxu1 %v2357_v43 }
  0xbb   : > { %1905 = vmatmul.mubr.msk.bf16.gmra.mrb[24].mxu0 %vm3157_vm14, %v1904_v47  ;;  %2108 = vmatprep.subr.bf16.mxu1 %v2358_v45 }
  0xbc   : > { %1050 = vmatprep.mubr.bf16.mxu0 %v761_v5  ;;  %2221 = vmatpush3.bf16.msra.mxu0 %v2343_v17 }
  0xbe   : > { %2109 = vmatpush3.bf16.msra.mxu1 %v2359_v4 }
  0xc3   : > { %1908 = vmatmul.mubr.msk.bf16.gmra.mrb[28].mxu0 %vm3173_vm12, %v1907_v10 }
 0x15e   : > { %v2030_v49 = vpop.f32.mrb[0].mxu0 }
 0x15f   : > { %v2031_v46 = vpop.f32.mrb[1].mxu0 }
 0x160   : > { %v2032_v52 = vadd.f32 %v2031_v46, %v2030_v49  ;;  %v2033_v53 = vpop.f32.mrb[2].mxu0  ;;  %v2192_v55 = vpop.f32.mrb[0].mxu1 }
 0x161   : > { %v2034_v56 = vpop.f32.mrb[3].mxu0  ;;  %v1093_v57 = vpop.f32.mrb[1].mxu1 }
 0x162   : > { %v2035_v54 = vadd.f32 %v2034_v56, %v2033_v53  ;;  %v1094_v62 = vadd.f32 %v2032_v52, %v1093_v57  ;;  %v2193_v63 = vpop.f32.mrb[2].mxu1 }
 0x163   : > { %v1096_v0 = vpop.f32.mrb[3].mxu1 }
 0x164   : > { %v1163_v1 = vmul.f32 %v3182_v32, %v1094_v62  ;;  %v1097_v29 = vadd.f32 %v2035_v54, %v1096_v0 }
 0x166   : > { %v2036_v39 = vpop.f32.mrb[4].mxu0  ;;  %v1186_v47 = vadd.f32 %v3187_v60, %v1163_v1  ;;  %v1164_v5 = vmul.f32 %v3182_v32, %v1097_v29 }
 0x167   : > { %v2037_v41 = vpop.f32.mrb[5].mxu0 }
 0x168   : > { %v2038_v3 = vadd.f32 %v2037_v41, %v2036_v39  ;;  %v2039_v6 = vpop.f32.mrb[6].mxu0  ;;  %v3192_v9 = vmax.f32 %v1186_v47, 0.0  ;;  %v1187_v10 = vadd.f32 %v3187_v60, %v1164_v5  ;;  %v2196_v17 = vpop.f32.mrb[4].mxu1 }
 0x169   : > { %v2040_v58 = vpop.f32.mrb[7].mxu0  ;;  %v1109_v30 = vpop.f32.mrb[5].mxu1 }
 0x16a   : > { %v1102_v8 = vadd.f32 %v2192_v55, %v2038_v3  ;;  %v2041_v18 = vadd.f32 %v2040_v58, %v2039_v6  ;;  %v1203_v44 = vmax.f32 %v1187_v10, 0.0  ;;  %v1218_v14 = vrot.slane %v3192_v9, 7  ;;  %v2197_v37 = vpop.f32.mrb[6].mxu1 }
 0x16b   : > { %v1266_v21 = vrot.slane %v3192_v9, 1  ;;  %v1112_v35 = vpop.f32.mrb[7].mxu1 }
 0x16c   : > { %v1165_v2 = vmul.f32 %v3182_v32, %v1102_v8  ;;  %v1105_v16 = vadd.f32 %v2193_v63, %v2041_v18  ;;  %v1219_v12 = vrot.slane %v1203_v44, 7  ;;  %v1267_v27 = vrot.slane %v1203_v44, 1 }
 0x16d   : > { %v1322_v28 = vpack.c.bf16 %v1203_v44, %v3192_v9 }
 0x16e   : > { %v1188_v33 = vadd.f32 %v3187_v60, %v1165_v2  ;;  %v1166_v34 = vmul.f32 %v3182_v32, %v1105_v16  ;;  %v2042_v36 = vpop.f32.mrb[8].mxu0  ;;  %v3205_v24 = vsel %vm664_vm1, %v1218_v14, %v1219_v12  ;;  %v1296_v42 = vsel %vm3647_vm7, %v1266_v21, %v1267_v27  ;;  %vm3649_vm7 = vmmov %vm3648_vm6 }
 0x16f   : > { %1562 = vmatprep.mubr.bf16.mxu1 %v1322_v28  ;;  %v2043_v25 = vpop.f32.mrb[9].mxu0 }
 0x170   : > { %v3211_v43 = vmax.f32 %v1188_v33, 0.0  ;;  %v1189_v45 = vadd.f32 %v3187_v60, %v1166_v34  ;;  %v2044_v4 = vadd.f32 %v2043_v25, %v2042_v36  ;;  %v2045_v49 = vpop.f32.mrb[10].mxu0  ;;  %v3222_v1 = vpop.f32.mrb[8].mxu1 }
 0x171   : > { %v2046_v46 = vpop.f32.mrb[11].mxu0  ;;  %v1125_v47 = vpop.f32.mrb[9].mxu1 }
 0x172   : > { %v1220_v52 = vrot.slane %v3211_v43, 7  ;;  %v1268_v53 = vrot.slane %v3211_v43, 1  ;;  %v3216_v55 = vmax.f32 %v1189_v45, 0.0  ;;  %v2047_v56 = vadd.f32 %v2046_v46, %v2045_v49  ;;  %v3234_v58 = vpop.f32.mrb[10].mxu1 }
 0x173   : > { %v1110_v54 = vadd.f32 %v2044_v4, %v1109_v30  ;;  %v1128_v2 = vpop.f32.mrb[11].mxu1 }
 0x174   : > { %v1221_v57 = vrot.slane %v3216_v55, 7  ;;  %v1269_v62 = vrot.slane %v3216_v55, 1  ;;  %v1113_v63 = vadd.f32 %v2047_v56, %v1112_v35  ;;  %v1295_v0 = vsel %vm3648_vm6, %v1267_v27, %v1268_v53 }
 0x175   : > { %v1167_v29 = vmul.f32 %v3182_v32, %v1110_v54  ;;  %v1984_v39 = vpack.c.bf16 %v1295_v0, %v1296_v42  ;;  %v1323_v5 = vpack.c.bf16 %v3216_v55, %v3211_v43  ;;  %v3229_v41 = vsel %vm664_vm1, %v1219_v12, %v1220_v52 }
 0x176   : > { %v1294_v3 = vsel %vm3649_vm7, %v1268_v53, %v1269_v62  ;;  %v1168_v6 = vmul.f32 %v3182_v32, %v1113_v63  ;;  %v2048_v10 = vpop.f32.mrb[12].mxu0  ;;  %v3238_v8 = vsel %vm664_vm1, %v1220_v52, %v1221_v57  ;;  %vm3652_vm7 = vmmov %vm3648_vm6 }
 0x177   : > { %v1190_v18 = vadd.f32 %v3187_v60, %v1167_v29  ;;  %v2049_v44 = vpop.f32.mrb[13].mxu0  ;;  %2222 = vmatprep.mubr.msk.bf16.mxu0 %vm2879_vm9, %v1984_v39  ;;  %vm3650_vm9 = vmmov %vm3648_vm6  ;;  %v3662_v11 = vpack.c.bf16 %v3238_v8, %v3229_v41 }
 0x178   : > { %v1191_v12 = vadd.f32 %v3187_v60, %v1168_v6  ;;  %v2050_v27 = vadd.f32 %v2049_v44, %v2048_v10  ;;  %v2051_v28 = vpop.f32.mrb[14].mxu0  ;;  %v3255_v46 = vpop.f32.mrb[12].mxu1 }
 0x179   : > { %v3246_v30 = vmax.f32 %v1190_v18, 0.0  ;;  %v2052_v33 = vpop.f32.mrb[15].mxu0  ;;  %v3259_v53 = vpop.f32.mrb[13].mxu1 }
 0x17a   : > { %v3248_v34 = vmax.f32 %v1191_v12, 0.0  ;;  %v1118_v36 = vadd.f32 %v2196_v17, %v2050_v27  ;;  %v2053_v25 = vadd.f32 %v2052_v33, %v2051_v28  ;;  %v3271_v39 = vpop.f32.mrb[14].mxu1 }
 0x17b   : > { %v1222_v35 = vrot.slane %v3246_v30, 7  ;;  %v1270_v26 = vrot.slane %v3246_v30, 1  ;;  %v3273_v6 = vpop.f32.mrb[15].mxu1 }
 0x17c   : > { %v1223_v42 = vrot.slane %v3248_v34, 7  ;;  %v1271_v45 = vrot.slane %v3248_v34, 1  ;;  %v1169_v4 = vmul.f32 %v3182_v32, %v1118_v36  ;;  %v1121_v49 = vadd.f32 %v2197_v37, %v2053_v25 }
 0x17d   : > { %v1293_v52 = vsel %vm3650_vm9, %v1269_v62, %v1270_v26  ;;  %v3265_v56 = vsel %vm664_vm1, %v1221_v57, %v1222_v35  ;;  %vm3654_vm9 = vmmov %vm3648_vm6  ;;  %v3663_v38 = vpack.c.bf16 %v3248_v34, %v3246_v30 }
 0x17e   : > { %v1987_v54 = vpack.c.bf16 %v1293_v52, %v1294_v3  ;;  %v1192_v63 = vadd.f32 %v3187_v60, %v1169_v4  ;;  %v1170_v0 = vmul.f32 %v3182_v32, %v1121_v49  ;;  %v2054_v37 = vpop.f32.mrb[16].mxu0  ;;  %v1292_v29 = vsel %vm3648_vm6, %v1270_v26, %v1271_v45 }
 0x17f   : > { %v2055_v62 = vpop.f32.mrb[17].mxu0  ;;  %v3277_v10 = vsel %vm664_vm1, %v1222_v35, %v1223_v42 }
 0x180   : > { %v3279_v57 = vmax.f32 %v1192_v63, 0.0  ;;  %v1193_v3 = vadd.f32 %v3187_v60, %v1170_v0  ;;  %v2056_v18 = vadd.f32 %v2055_v62, %v2054_v37  ;;  %2223 = vmatmul.mubr.msk.bf16.vlgmr.msra.gmra.mrb[32].mxu0 %vm2903_vm11, %v1987_v54  ;;  %v2057_v44 = vpop.f32.mrb[18].mxu0  ;;  %vm3651_vm11 = vmmov %vm3648_vm6  ;;  %v3664_v19 = vpack.c.bf16 %v3277_v10, %v3265_v56 }
 0x181   : > { %v2058_v27 = vpop.f32.mrb[19].mxu0 }
 0x182   : > { %v1224_v28 = vrot.slane %v3279_v57, 7  ;;  %v1272_v33 = vrot.slane %v3279_v57, 1  ;;  %v3288_v36 = vmax.f32 %v1193_v3, 0.0  ;;  %v2059_v25 = vadd.f32 %v2058_v27, %v2057_v44 }
 0x183   : > { %v1126_v35 = vadd.f32 %v2056_v18, %v1125_v47 }
 0x184   : > { %v1225_v26 = vrot.slane %v3288_v36, 7  ;;  %v1273_v4 = vrot.slane %v3288_v36, 1  ;;  %v1129_v49 = vadd.f32 %v2059_v25, %v1128_v2  ;;  %v1291_v40 = vsel %vm3651_vm11, %v1271_v45, %v1272_v33 }
 0x185   : > { %v1171_v52 = vmul.f32 %v3182_v32, %v1126_v35  ;;  %v1990_v54 = vpack.c.bf16 %v1291_v40, %v1292_v29  ;;  %v3299_v0 = vsel %vm664_vm1, %v1223_v42, %v1224_v28  ;;  %v3665_v20 = vpack.c.bf16 %v3288_v36, %v3279_v57 }
 0x186   : > { %v1172_v47 = vmul.f32 %v3182_v32, %v1129_v49  ;;  %v2060_v37 = vpop.f32.mrb[20].mxu0  ;;  %v1290_v62 = vsel %vm3652_vm7, %v1272_v33, %v1273_v4  ;;  %v3306_v2 = vsel %vm664_vm1, %v1224_v28, %v1225_v26 }
 0x187   : > { %v1194_v45 = vadd.f32 %v3187_v60, %v1171_v52  ;;  %v2061_v29 = vpop.f32.mrb[21].mxu0  ;;  %2226 = vmatprep.mubr.msk.bf16.mxu0 %vm2962_vm15, %v1990_v54  ;;  %vm3653_vm15 = vmmov %vm3648_vm6  ;;  %v3666_v9 = vpack.c.bf16 %v3306_v2, %v3299_v0 }
 0x188   : > { %v1195_v3 = vadd.f32 %v3187_v60, %v1172_v47  ;;  %v2062_v18 = vadd.f32 %v2061_v29, %v2060_v37  ;;  %v2063_v44 = vpop.f32.mrb[22].mxu0 }
 0x189   : > { %v3314_v27 = vmax.f32 %v1194_v45, 0.0  ;;  %v2064_v33 = vpop.f32.mrb[23].mxu0 }
 0x18a   : > { %v3316_v25 = vmax.f32 %v1195_v3, 0.0  ;;  %v1134_v28 = vadd.f32 %v3222_v1, %v2062_v18  ;;  %v2065_v35 = vadd.f32 %v2064_v33, %v2063_v44 }
 0x18b   : > { %v1226_v49 = vrot.slane %v3314_v27, 7  ;;  %v1274_v7 = vrot.slane %v3314_v27, 1 }
 0x18c   : > { %v1227_v40 = vrot.slane %v3316_v25, 7  ;;  %v1275_v52 = vrot.slane %v3316_v25, 1  ;;  %v1173_v54 = vmul.f32 %v3182_v32, %v1134_v28  ;;  %v1137_v47 = vadd.f32 %v3234_v58, %v2065_v35 }
 0x18d   : > { %v1289_v37 = vsel %vm3653_vm15, %v1273_v4, %v1274_v7  ;;  %v3331_v1 = vsel %vm664_vm1, %v1225_v26, %v1226_v49  ;;  %v3668_v59 = vpack.c.bf16 %v3316_v25, %v3314_v27  ;;  %v2360_v25 = vld [vmem:[%s2763_s21] sm:$0xff] }
 0x18e   : > { %v1196_v29 = vadd.f32 %v3187_v60, %v1173_v54  ;;  %v1174_v3 = vmul.f32 %v3182_v32, %v1137_v47  ;;  %v2066_v18 = vpop.f32.mrb[24].mxu0  ;;  %v1993_v44 = vpack.c.bf16 %v1289_v37, %v1290_v62  ;;  %v1288_v33 = vsel %vm3654_vm9, %v1274_v7, %v1275_v52 }
 0x18f   : > { %v2067_v58 = vpop.f32.mrb[25].mxu0  ;;  %v3339_v4 = vsel %vm664_vm1, %v1226_v49, %v1227_v40 }
 0x190   : > { %v3341_v28 = vmax.f32 %v1196_v29, 0.0  ;;  %v1197_v35 = vadd.f32 %v3187_v60, %v1174_v3  ;;  %v2068_v26 = vadd.f32 %v2067_v58, %v2066_v18  ;;  %2227 = vmatmul.mubr.msk.bf16.gmra.mrb[36].mxu0 %vm2991_vm0, %v1993_v44  ;;  %v2069_v54 = vpop.f32.mrb[26].mxu0  ;;  %vm3655_vm0 = vmmov %vm3648_vm6 }
 0x191   : > { %v2070_v47 = vpop.f32.mrb[27].mxu0  ;;  %vm3656_vm6 = vmmov %vm3655_vm0 }
 0x192   : > { %v1228_v7 = vrot.slane %v3341_v28, 7  ;;  %v1276_v37 = vrot.slane %v3341_v28, 1  ;;  %v3350_v45 = vmax.f32 %v1197_v35, 0.0  ;;  %v2071_v49 = vadd.f32 %v2070_v47, %v2069_v54  ;;  %vm3658_vm11 = vmmov %vm3655_vm0 }
 0x193   : > { %v1142_v29 = vadd.f32 %v2068_v26, %v3259_v53  ;;  %vm3659_vm7 = vmmov %vm3655_vm0 }
 0x194   : > { %v1229_v3 = vrot.slane %v3350_v45, 7  ;;  %v1277_v18 = vrot.slane %v3350_v45, 1  ;;  %v1145_v31 = vadd.f32 %v2071_v49, %v3273_v6  ;;  %v1287_v44 = vsel %vm3655_vm0, %v1275_v52, %v1276_v37  ;;  %vm3661_vm15 = vmmov %vm3655_vm0 }
 0x195   : > { %v1175_v58 = vmul.f32 %v3182_v32, %v1142_v29  ;;  %v1996_v62 = vpack.c.bf16 %v1287_v44, %v1288_v33  ;;  %v3363_v35 = vsel %vm664_vm1, %v1227_v40, %v1228_v7  ;;  %v3671_v51 = vpack.c.bf16 %v3350_v45, %v3341_v28  ;;  %v2361_v28 = vld [vmem:[%s2763_s21 + $0x8] sm:$0xff] }
 0x196   : > { %v1176_v53 = vmul.f32 %v3182_v32, %v1145_v31  ;;  %v2072_v26 = vpop.f32.mrb[28].mxu0  ;;  %v1286_v54 = vsel %vm3656_vm6, %v1276_v37, %v1277_v18  ;;  %v1238_v6 = vsel %vm664_vm1, %v1228_v7, %v1229_v3 }
 0x197   : > { %v1198_v52 = vadd.f32 %v3187_v60, %v1175_v58  ;;  %v2073_v47 = vpop.f32.mrb[29].mxu0  ;;  %2230 = vmatprep.mubr.msk.bf16.mxu0 %vm3012_vm2, %v1996_v62  ;;  %v1975_v33 = vpack.c.bf16 %v1238_v6, %v3363_v35  ;;  %vm3657_vm2 = vmmov %vm3655_vm0 }
 0x198   : > { %v1199_v40 = vadd.f32 %v3187_v60, %v1176_v53  ;;  %v2074_v49 = vadd.f32 %v2073_v47, %v2072_v26  ;;  %v2075_v29 = vpop.f32.mrb[30].mxu0 }
 0x199   : > { %v1214_v31 = vmax.f32 %v1198_v52, 0.0  ;;  %v2076_v44 = vpop.f32.mrb[31].mxu0 }
 0x19a   : > { %v1215_v42 = vmax.f32 %v1199_v40, 0.0  ;;  %v1150_v37 = vadd.f32 %v3255_v46, %v2074_v49  ;;  %v2077_v63 = vadd.f32 %v2076_v44, %v2075_v29 }
 0x19b   : > { %v1230_v12 = vrot.slane %v1214_v31, 7  ;;  %v1278_v7 = vrot.slane %v1214_v31, 1 }
 0x19c   : > { %v1231_v17 = vrot.slane %v1215_v42, 7  ;;  %v1279_v58 = vrot.slane %v1215_v42, 1  ;;  %v1177_v16 = vmul.f32 %v3182_v32, %v1150_v37  ;;  %v1153_v48 = vadd.f32 %v3271_v39, %v2077_v63 }
 0x19d   : > { %v1285_v62 = vsel %vm3657_vm2, %v1277_v18, %v1278_v7  ;;  %v1328_v35 = vpack.c.bf16 %v1215_v42, %v1214_v31  ;;  %v1237_v53 = vsel %vm664_vm1, %v1229_v3, %v1230_v12 }
 0x19e   : > { %v1200_v26 = vadd.f32 %v3187_v60, %v1177_v16  ;;  %v1178_v46 = vmul.f32 %v3182_v32, %v1153_v48  ;;  %v1999_v6 = vpack.c.bf16 %v1285_v62, %v1286_v54  ;;  %v1284_v52 = vsel %vm3658_vm11, %v1278_v7, %v1279_v58 }
 0x19f   : > { %v1236_v47 = vsel %vm664_vm1, %v1230_v12, %v1231_v17 }
 0x1a0   : > { %v1216_v40 = vmax.f32 %v1200_v26, 0.0  ;;  %v1201_v39 = vadd.f32 %v3187_v60, %v1178_v46  ;;  %2231 = vmatmul.mubr.msk.bf16.gmra.mrb[40].mxu0 %vm3077_vm10, %v1999_v6  ;;  %v1978_v63 = vpack.c.bf16 %v1236_v47, %v1237_v53  ;;  %vm3660_vm10 = vmmov %vm3655_vm0  ;;  %v2362_v46 = vld [vmem:[%s2763_s21 + $0x10] sm:$0xff] }
 0x1a2   : > { %v1232_v42 = vrot.slane %v1216_v40, 7  ;;  %v1280_v3 = vrot.slane %v1216_v40, 1  ;;  %v1217_v18 = vmax.f32 %v1201_v39, 0.0 }
 0x1a4   : > { %v1233_v16 = vrot.slane %v1217_v18, 7  ;;  %v1281_v49 = vrot.slane %v1217_v18, 1  ;;  %v1283_v32 = vsel %vm3659_vm7, %v1279_v58, %v1280_v3  ;;  %v1329_v54 = vpack.c.bf16 %v1217_v18, %v1216_v40  ;;  %v2363_v40 = vld [vmem:[%s2763_s21 + $0x18] sm:$0xff] }
 0x1a5   : > { %v2002_v29 = vpack.c.bf16 %v1283_v32, %v1284_v52  ;;  %v1235_v12 = vsel %vm664_vm1, %v1231_v17, %v1232_v42  ;;  %v2364_v32 = vld [vmem:[%s2763_s21 + $0x20] sm:$0xff] }
 0x1a6   : > { %v1249_v15 = vsel %vm664_vm1, %v1233_v16, %v1218_v14  ;;  %v1282_v60 = vsel %vm3660_vm10, %v1280_v3, %v1281_v49  ;;  %v1297_v31 = vsel %vm3661_vm15, %v1281_v49, %v1266_v21  ;;  %v1234_v44 = vsel %vm664_vm1, %v1232_v42, %v1233_v16 }
 0x1a7   : > { %v1960_v37 = vpack.c.bf16 %v3205_v24, %v1249_v15  ;;  %2234 = vmatprep.mubr.msk.bf16.mxu0 %vm3098_vm5, %v2002_v29  ;;  %v2005_v17 = vpack.c.bf16 %v1297_v31, %v1282_v60  ;;  %v1981_v7 = vpack.c.bf16 %v1234_v44, %v1235_v12  ;;  %vm3667_vm1 = vnez %v3634_v23  ;;  %v2365_v15 = vld [vmem:[%s2763_s21 + $0x28] sm:$0xff] }
 0x1a8   : > { %v3669_v14 = vpack.c.bf16 %v3339_v4, %v3331_v1 }
 0x1a9   : > { %1961 = vmatmul.mubr.msk.bf16.vlgmr.msra.gmra.mrb[16].mxu1 %vm2867_vm8, %v1960_v37  ;;  %2235 = vmatmul.mubr.msk.bf16.gmra.mrb[44].mxu0 %vm3118_vm3, %v2005_v17  ;;  %vm3670_vm3 = vnez %v3640_v50  ;;  %vm3672_vm8 = vnez %v3642_v61 }
 0x1aa   : > { %1570 = vmatprep.mubr.bf16.mxu1 %v1323_v5 }
 0x1b1   : > { %1964 = vmatmul.mubr.msk.bf16.gmra.mrb[20].mxu1 %vm2936_vm13, %v3662_v11 }
 0x1b2   : > { %1578 = vmatprep.mubr.bf16.mxu1 %v3663_v38  ;;  %v2366_v38 = vld [vmem:[%s2763_s21 + $0x30] sm:$0xff] }
 0x1b9   : > { %1967 = vmatmul.mubr.msk.bf16.gmra.mrb[24].mxu1 %vm3027_vm4, %v3664_v19 }
 0x1ba   : > { %1586 = vmatprep.mubr.bf16.mxu1 %v3665_v20 }
 0x1c1   : > { %1970 = vmatmul.mubr.msk.bf16.gmra.mrb[28].mxu1 %vm3667_vm1, %v3666_v9 }
 0x1c2   : > { %1594 = vmatprep.mubr.bf16.mxu1 %v3668_v59  ;;  %v2367_v59 = vld [vmem:[%s2763_s21 + $0x38] sm:$0xff] }
 0x1c9   : > { %1973 = vmatmul.mubr.msk.bf16.gmra.mrb[32].mxu1 %vm3670_vm3, %v3669_v14 }
 0x1ca   : > { %1602 = vmatprep.mubr.bf16.mxu1 %v3671_v51 }
 0x1d1   : > { %1976 = vmatmul.mubr.msk.bf16.gmra.mrb[36].mxu1 %vm3672_vm8, %v1975_v33 }
 0x1d2   : > { %1610 = vmatprep.mubr.bf16.mxu1 %v1328_v35 }
 0x1d9   : > { %1979 = vmatmul.mubr.msk.bf16.gmra.mrb[40].mxu1 %vm3157_vm14, %v1978_v63 }
 0x1da   : > { %1618 = vmatprep.mubr.bf16.mxu1 %v1329_v54 }
 0x1e1   : > { %1982 = vmatmul.mubr.msk.bf16.gmra.mrb[44].mxu1 %vm3173_vm12, %v1981_v7 }
 0x253   : > { %v2224_v23 = vpop.f32.mrb[32].mxu0 }
 0x254   : > { %v1661_v21 = vpop.f32.mrb[33].mxu0 }
 0x255   : > { %v2225_v24 = vpop.f32.mrb[34].mxu0 }
 0x256   : > { %v1664_v50 = vpop.f32.mrb[35].mxu0 }
 0x263   : > { %v3455_v43 = vpop.f32.mrb[36].mxu0 }
 0x264   : > { %v1677_v55 = vpop.f32.mrb[37].mxu0 }
 0x265   : > { %v3457_v5 = vpop.f32.mrb[38].mxu0 }
 0x266   : > { %v1680_v61 = vpop.f32.mrb[39].mxu0 }
 0x273   : > { %v3459_v41 = vpop.f32.mrb[40].mxu0 }
 0x274   : > { %v3461_v8 = vpop.f32.mrb[41].mxu0 }
 0x275   : > { %v3463_v22 = vpop.f32.mrb[42].mxu0 }
 0x276   : > { %v3465_v13 = vpop.f32.mrb[43].mxu0 }
 0x27c   : > { %v2110_v30 = vpop.f32.mrb[16].mxu1  ;;  %v3467_v34 = vpop.f32.mrb[44].mxu0 }
 0x27d   : > { %v2111_v56 = vpop.f32.mrb[17].mxu1  ;;  %v3469_v10 = vpop.f32.mrb[45].mxu0 }
 0x27e   : > { %v2112_v57 = vadd.f32 %v2111_v56, %v2110_v30  ;;  %v2113_v36 = vpop.f32.mrb[18].mxu1  ;;  %v3471_v0 = vpop.f32.mrb[46].mxu0 }
 0x27f   : > { %v2114_v2 = vpop.f32.mrb[19].mxu1  ;;  %v3473_v27 = vpop.f32.mrb[47].mxu0 }
 0x280   : > { %v1565_v45 = vadd.f32 %v2360_v25, %v2112_v57  ;;  %v2115_v1 = vadd.f32 %v2114_v2, %v2113_v36  ;;  %v2369_v57 = vld [vmem:[%s2763_s21 + $0x48] sm:$0xff] }
 0x282   : > { %v1662_v4 = vadd.f32 %v1661_v21, %v1565_v45  ;;  %v1568_v33 = vadd.f32 %v2361_v28, %v2115_v1  ;;  %v2370_v28 = vld [vmem:[%s2763_s21 + $0x50] sm:$0xff] }
 0x284   : > { %1724 = vst [vmem:[%s3479_s12] sm:$0xff] %v1662_v4  ;;  %v1665_v58 = vadd.f32 %v1664_v50, %v1568_v33  ;;  %v2116_v48 = vpop.f32.mrb[20].mxu1 }
 0x285   : > { %v2117_v62 = vpop.f32.mrb[21].mxu1 }
 0x286   : > { %1725 = vst [vmem:[%s3479_s12 + $0x8] sm:$0xff] %v1665_v58  ;;  %v2118_v35 = vadd.f32 %v2117_v62, %v2116_v48  ;;  %v2119_v53 = vpop.f32.mrb[22].mxu1  ;;  %v2371_v48 = vld [vmem:[%s2763_s21 + $0x58] sm:$0xff] }
 0x287   : > { %v2120_v26 = vpop.f32.mrb[23].mxu1 }
 0x288   : > { %v1573_v6 = vadd.f32 %v2362_v46, %v2118_v35  ;;  %v2121_v52 = vadd.f32 %v2120_v26, %v2119_v53 }
 0x28a   : > { %v1670_v47 = vadd.f32 %v2224_v23, %v1573_v6  ;;  %v1576_v39 = vadd.f32 %v2363_v40, %v2121_v52  ;;  %v2372_v52 = vld [vmem:[%s2763_s21 + $0x60] sm:$0xff] }
 0x28c   : > { %1726 = vst [vmem:[%s3479_s12 + $0x10] sm:$0xff] %v1670_v47  ;;  %v1673_v63 = vadd.f32 %v2225_v24, %v1576_v39  ;;  %v2122_v42 = vpop.f32.mrb[24].mxu1  ;;  %v2373_v39 = vld [vmem:[%s2763_s21 + $0x68] sm:$0xff] }
 0x28d   : > { %v2123_v3 = vpop.f32.mrb[25].mxu1 }
 0x28e   : > { %1727 = vst [vmem:[%s3479_s12 + $0x18] sm:$0xff] %v1673_v63  ;;  %v2124_v18 = vadd.f32 %v2123_v3, %v2122_v42  ;;  %v2125_v16 = vpop.f32.mrb[26].mxu1 }
 0x28f   : > { %v2126_v49 = vpop.f32.mrb[27].mxu1 }
 0x290   : > { %v1581_v54 = vadd.f32 %v2364_v32, %v2124_v18  ;;  %v2127_v29 = vadd.f32 %v2126_v49, %v2125_v16  ;;  %v2374_v32 = vld [vmem:[%s2763_s21 + $0x70] sm:$0xff] }
 0x292   : > { %v1678_v12 = vadd.f32 %v1677_v55, %v1581_v54  ;;  %v1584_v60 = vadd.f32 %v2365_v15, %v2127_v29 }
 0x294   : > { %1728 = vst [vmem:[%s3479_s12 + $0x20] sm:$0xff] %v1678_v12  ;;  %v1681_v31 = vadd.f32 %v1680_v61, %v1584_v60  ;;  %v2128_v44 = vpop.f32.mrb[28].mxu1  ;;  %v2368_v61 = vld [vmem:[%s2763_s21 + $0x40] sm:$0xff]  ;;  %v2375_v12 = vld [vmem:[%s2763_s21 + $0x78] sm:$0xff]  ;;  %s2542_s21 = smov [#allocation8]  }
 0x295   : > { %v2129_v37 = vpop.f32.mrb[29].mxu1  ;;  %s2466_s11 = sshll.u32 %s2542_s21, 4  ;;  %s2467_s11 = int_to_ptr.vmem [resolvable:$false] %s2466_s11 }
 0x296   : > { %1729 = vst [vmem:[%s3479_s12 + $0x28] sm:$0xff] %v1681_v31  ;;  %v2130_v17 = vadd.f32 %v2129_v37, %v2128_v44  ;;  %v2131_v7 = vpop.f32.mrb[30].mxu1  ;;  %s2468_s22 = scalar_lea.vmem %s2467_s11, 4096  ;;  %p2469_p7 = scmp.lt.s32.totalorder %s3525_s29, %s2467_s11 }
 0x297   : > { %v2132_v11 = vpop.f32.mrb[31].mxu1  ;;  %p2470_p9 = scmp.lt.s32.totalorder %s2468_s22, %s2462_s20 }
 0x298   : > { %v1589_v19 = vadd.f32 %v2366_v38, %v2130_v17  ;;  %v2133_v20 = vadd.f32 %v2132_v11, %v2131_v7 }
 0x299   : > { %p2471_p12 = por %p2470_p9, %p2469_p7 }
 0x29a   : > { %v1686_v9 = vadd.f32 %v3455_v43, %v1589_v19  ;;  %v1592_v14 = vadd.f32 %v2367_v59, %v2133_v20 }
 0x29b   : > { %p2472_p2 = pnand %p2471_p12, %p2465_p3 }
 0x29c   : > { %1730 = vst [vmem:[%s3479_s12 + $0x30] sm:$0xff] %v1686_v9  ;;  %v1689_v51 = vadd.f32 %v3457_v5, %v1592_v14  ;;  %v2134_v23 = vpop.f32.mrb[32].mxu1 }
 0x29d   : > { %v2135_v21 = vpop.f32.mrb[33].mxu1 }
 0x29e   : > { %1731 = vst [vmem:[%s3479_s12 + $0x38] sm:$0xff] %v1689_v51  ;;  %v2136_v24 = vadd.f32 %v2135_v21, %v2134_v23  ;;  %v2137_v50 = vpop.f32.mrb[34].mxu1 }
 0x29f   : > { %v2138_v55 = vpop.f32.mrb[35].mxu1 }
 0x2a0   : > { %v1597_v30 = vadd.f32 %v2368_v61, %v2136_v24  ;;  %v2139_v56 = vadd.f32 %v2138_v55, %v2137_v50 }
 0x2a2   : > { %v1694_v43 = vadd.f32 %v3461_v8, %v1597_v30  ;;  %v1600_v36 = vadd.f32 %v2369_v57, %v2139_v56 }
 0x2a4   : > { %1732 = vst [vmem:[%s3479_s12 + $0x40] sm:$0xff] %v1694_v43  ;;  %v1697_v5 = vadd.f32 %v3465_v13, %v1600_v36  ;;  %v2140_v2 = vpop.f32.mrb[36].mxu1 }
 0x2a5   : > { %v2141_v25 = vpop.f32.mrb[37].mxu1 }
 0x2a6   : > { %1733 = vst [vmem:[%s3479_s12 + $0x48] sm:$0xff] %v1697_v5  ;;  %v2142_v45 = vadd.f32 %v2141_v25, %v2140_v2  ;;  %v2143_v1 = vpop.f32.mrb[38].mxu1 }
 0x2a7   : > { %v2144_v4 = vpop.f32.mrb[39].mxu1 }
 0x2a8   : > { %v1605_v33 = vadd.f32 %v2370_v28, %v2142_v45  ;;  %v2145_v58 = vadd.f32 %v2144_v4, %v2143_v1 }
 0x2aa   : > { %v1702_v8 = vadd.f32 %v3459_v41, %v1605_v33  ;;  %v1608_v62 = vadd.f32 %v2371_v48, %v2145_v58 }
 0x2ac   : > { %1734 = vst [vmem:[%s3479_s12 + $0x50] sm:$0xff] %v1702_v8  ;;  %v1705_v13 = vadd.f32 %v3463_v22, %v1608_v62  ;;  %v2146_v35 = vpop.f32.mrb[40].mxu1 }
 0x2ad   : > { %v2147_v53 = vpop.f32.mrb[41].mxu1 }
 0x2ae   : > { %1735 = vst [vmem:[%s3479_s12 + $0x58] sm:$0xff] %v1705_v13  ;;  %v2148_v26 = vadd.f32 %v2147_v53, %v2146_v35  ;;  %v2149_v46 = vpop.f32.mrb[42].mxu1 }
 0x2af   : > { %v2150_v6 = vpop.f32.mrb[43].mxu1 }
 0x2b0   : > { %v1613_v47 = vadd.f32 %v2372_v52, %v2148_v26  ;;  %v2151_v40 = vadd.f32 %v2150_v6, %v2149_v46 }
 0x2b2   : > { %v1710_v41 = vadd.f32 %v3469_v10, %v1613_v47  ;;  %v1616_v63 = vadd.f32 %v2373_v39, %v2151_v40 }
 0x2b4   : > { %1736 = vst [vmem:[%s3479_s12 + $0x60] sm:$0xff] %v1710_v41  ;;  %v1713_v22 = vadd.f32 %v3473_v27, %v1616_v63  ;;  %v2152_v42 = vpop.f32.mrb[44].mxu1 }
 0x2b5   : > { %v2153_v3 = vpop.f32.mrb[45].mxu1 }
 0x2b6   : > { %1737 = vst [vmem:[%s3479_s12 + $0x68] sm:$0xff] %v1713_v22  ;;  %v2154_v18 = vadd.f32 %v2153_v3, %v2152_v42  ;;  %v2155_v16 = vpop.f32.mrb[46].mxu1 }
 0x2b7   : > { %v2156_v49 = vpop.f32.mrb[47].mxu1 }
 0x2b8   : > { %v1621_v54 = vadd.f32 %v2374_v32, %v2154_v18  ;;  %v2157_v29 = vadd.f32 %v2156_v49, %v2155_v16 }
 0x2ba   : > { %v1718_v10 = vadd.f32 %v3467_v34, %v1621_v54  ;;  %v1624_v15 = vadd.f32 %v2375_v12, %v2157_v29 }
 0x2bc   : > { %1738 = vst [vmem:[%s3479_s12 + $0x70] sm:$0xff] %v1718_v10  ;;  %v1721_v27 = vadd.f32 %v3471_v0, %v1624_v15 }
 0x2be   : > { %1739 = vst [vmem:[%s3479_s12 + $0x78] sm:$0xff] %v1721_v27 }
 0x2bf   : > { %2475 = shalt.err (!%p2472_p2)
}
 0x2c0   : > { %s2476_s10 = scalar_lea.hbm %s3523_s9, 2048  ;;  %s2480_s12 = scalar_lea.hbm %s3579_s7, 4096 }
 0x2c1   : > { %p2477_p13 = scmp.ne.s32.totalorder %s3523_s9, %s2476_s10  ;;  %p2481_p4 = scmp.lt.u32.totalorder %s3523_s9, %s3579_s7 }
 0x2c2   : > { %p2482_p5 = scmp.lt.u32.totalorder %s2480_s12, %s2476_s10  ;;  %p2484_p11 = scmp.lt.u32.totalorder %s2476_s10, %s3523_s9 }
 0x2c3   : > { %p2478_p6 = pnand %p2477_p13, %p3673_p0 }
 0x2c4   : > { %p2483_p8 = por %p2482_p5, %p2481_p4 }
 0x2c5   : > { %p2479_p10 = pneg %p2478_p6 }
 0x2c6   : > { %p2485_p1 = por %p2484_p11, %p2483_p8 }
 0x2c8   : > { %p2486_p3 = pnand %p2485_p1, %p2479_p10 }
 0x2ca   : > { %2489 = shalt.err (!%p2486_p3)
}
 0x2cb   : > { %s2543_s30 = smov 128   ;;  %s2544_s20 = smov 8  }
 0x2cc   : > { %2248 = dma.vmem_to_hbm [thread:$0]  (%p3673_p0), %s3525_s29, 2048, %s3523_s9, %s1741_s28, %s2543_s30, %s2543_s30, %s2544_s20  }
 0x2cd PF: > { %s1769_s21 = sand.u32 1, %s2520_s24   ;;  %p3674_p7 = scmp.ne.s32.totalorder %s3588_s8, 0 }
 0x2ce   : > { %p3675_p9 = scmp.ge.s32.totalorder %s2532_s27, 2  ;;  %s1770_s11 = scalar_lea.sflag [#allocation4], %s1769_s21 }
 0x2d0   : > { %p2262_p12 = pnand %p3675_p9, %p3674_p7 }
 0x2d2   : > { %2515 = dma.done.wait (!%p2262_p12), %s1770_s11, 2048  }
 0x2d3   : > { %2517 = vsyncadd (!%p2262_p12), %s1770_s11, 4294965248  ;;  %p21_p2 = scmp.ge.s32.totalorder %s2695_s13, 4   ;;  %s3676_s24 = smov %s2524_s25 }
 0x2d4   : > { %s3677_s25 = smov %s2528_s26  ;;  %s3678_s26 = smov %s2711_s17 }
 0x2d5   : > { %s3679_s27 = smov %s2695_s13  ;;  %23 = sbr.rel (!%p21_p2) target bundleno = 6 (0x6), region = 101 }
 0x2dc   :  { %1775 = vsyncpa [#allocation3], 1 }
 0x2dd   :  { %1777 = vsyncpa [#allocation3 + $0x1], 1 }
 0x2de   :  { %1778 = vsyncpa [#allocation6], 1 }
 0x2df   :  { %1779 = vsyncpa [#allocation4], 1 }
 0x2e0   :  { %1781 = vsyncpa [#allocation4 + $0x1], 1 }

</bundles_post_ra>
